<compile_context>
chip_gen: v7x
topology: tpu7x:2x2x1
jax: 0.10.0
libtpu: 0.0.40
codegen_flags: <defaults>
</compile_context>

<pallas_src>
import numpy as np
import jax
import jax.numpy as jnp
from jax import lax
from jax.experimental import pallas as pl
from jax.experimental.pallas import tpu as pltpu

LEAK = 0.2
BN_EPS = 1e-5
HEAD_PAD = 128   # lane-dense padding for the 1-wide discriminator head
EMB_PAD = 16     # sublane-aligned (bf16) padding of the 10-wide embedding
MAX_TB = 256     # batch tile cap (sized for v7x's 64 MiB VMEM)
VMEM_LIMIT = 32 * 1024 * 1024


def _leaky_relu(x):
    return jnp.maximum(x, LEAK * x)


def _dot(x, w_ref):
    return jnp.dot(x, w_ref[...], preferred_element_type=jnp.float32)


# ----------------------------- kernels ------------------------------------ #

def _gen_kernel(emb_ref, z_ref,
                w1e, w1z, b1,
                w2, b2, w3, b3, w4, b4,
                w5, b5,
                out_ref):
    # block 1: Linear(latent+classes -> 128) + LeakyReLU (split-K, no concat)
    h = _dot(emb_ref[...], w1e) + _dot(z_ref[...], w1z) + b1[...]
    h = _leaky_relu(h).astype(jnp.bfloat16)
    # blocks 2-4: Linear (eval-mode BatchNorm folded offline) + LeakyReLU
    h = _leaky_relu(_dot(h, w2) + b2[...]).astype(jnp.bfloat16)
    h = _leaky_relu(_dot(h, w3) + b3[...]).astype(jnp.bfloat16)
    h = _leaky_relu(_dot(h, w4) + b4[...]).astype(jnp.bfloat16)
    # output head: Linear + Tanh, stored as bf16
    out_ref[...] = jnp.tanh(_dot(h, w5) + b5[...]).astype(out_ref.dtype)


def _disc_kernel(img_ref, emb_ref,
                 w1i, w1e, b1,
                 w2, b2, w3, b3,
                 w45, b45,
                 out_ref):
    # Dropout layers are identity in eval mode.
    h = _dot(img_ref[...], w1i) + _dot(emb_ref[...], w1e) + b1[...]
    h = _leaky_relu(h).astype(jnp.bfloat16)
    h = _leaky_relu(_dot(h, w2) + b2[...]).astype(jnp.bfloat16)
    h = _leaky_relu(_dot(h, w3) + b3[...]).astype(jnp.bfloat16)
    # fused (256 -> 128 -> 1) activation-free tail, zero-padded to 128 lanes;
    # column 0 holds the real logit.
    out_ref[...] = jax.nn.sigmoid(_dot(h, w45) + b45[...])


# --------------------------- pallas wrappers ------------------------------- #

def _act_spec(tb, n):
    return pl.BlockSpec((tb, n), lambda i: (i, 0))


def _const_spec(shape):
    return pl.BlockSpec(shape, lambda i: (0, 0))


def _cost_estimate(batch, in_widths, params, out_width, out_itemsize, trans_w):
    flops = 0
    bytes_accessed = 0
    for p in params:
        bytes_accessed += int(p.size) * p.dtype.itemsize
        if p.shape[0] > 1:                       # weight slab (bias rows are 1)
            flops += 2 * batch * p.shape[0] * p.shape[1]
    bytes_accessed += batch * sum(in_widths) * 2     # bf16 activation inputs
    bytes_accessed += batch * out_width * out_itemsize
    return pl.CostEstimate(flops=flops,
                           transcendentals=batch * trans_w,
                           bytes_accessed=bytes_accessed)


def _batch_tile(b):
    return b if b <= MAX_TB else MAX_TB


def run_generator(emb, z, gen_params):
    b = emb.shape[0]
    out_dim = gen_params[-2].shape[1]
    tb = _batch_tile(b)
    in_specs = [_act_spec(tb, emb.shape[1]), _act_spec(tb, z.shape[1])]
    in_specs += [_const_spec(p.shape) for p in gen_params]
    return pl.pallas_call(
        _gen_kernel,
        out_shape=jax.ShapeDtypeStruct((b, out_dim), jnp.bfloat16),
        grid=(pl.cdiv(b, tb),),
        in_specs=in_specs,
        out_specs=_act_spec(tb, out_dim),
        compiler_params=pltpu.CompilerParams(
            dimension_semantics=("parallel",),
            vmem_limit_bytes=VMEM_LIMIT),
        cost_estimate=_cost_estimate(
            b, (emb.shape[1], z.shape[1]), gen_params, out_dim, 2, out_dim),
    )(emb, z, *gen_params)


def run_discriminator(flat_img, emb, disc_params):
    b = flat_img.shape[0]
    tb = _batch_tile(b)
    in_specs = [_act_spec(tb, flat_img.shape[1]), _act_spec(tb, emb.shape[1])]
    in_specs += [_const_spec(p.shape) for p in disc_params]
    return pl.pallas_call(
        _disc_kernel,
        out_shape=jax.ShapeDtypeStruct((b, HEAD_PAD), jnp.float32),
        grid=(pl.cdiv(b, tb),),
        in_specs=in_specs,
        out_specs=_act_spec(tb, HEAD_PAD),
        compiler_params=pltpu.CompilerParams(
            dimension_semantics=("parallel",),
            vmem_limit_bytes=VMEM_LIMIT),
        cost_estimate=_cost_estimate(
            b, (flat_img.shape[1], emb.shape[1]), disc_params,
            HEAD_PAD, 4, HEAD_PAD),
    )(flat_img, emb, *disc_params)


# ------------------------------ parameters --------------------------------- #

def _linear_init(key, fan_in, fan_out):
    """PyTorch nn.Linear default init, W stored as (fan_in, fan_out)."""
    k = 1.0 / np.sqrt(fan_in)
    kw, kb = jax.random.split(key)
    w = jax.random.uniform(kw, (fan_in, fan_out), jnp.float32, -k, k)
    bias = jax.random.uniform(kb, (1, fan_out), jnp.float32, -k, k)
    return w, bias


def _fold_bn(w, b, gamma, beta, mean, var, eps=BN_EPS):
    """Fold eval-mode BatchNorm1d into the preceding Linear (f32)."""
    scale = gamma * lax.rsqrt(var + eps)          # (1, N)
    return w * scale, (b - mean) * scale + beta


def _bn_init(n):
    gamma = jnp.ones((1, n), jnp.float32)
    beta = jnp.zeros((1, n), jnp.float32)
    mean = jnp.zeros((1, n), jnp.float32)
    var = jnp.ones((1, n), jnp.float32)
    return gamma, beta, mean, var


def _bf16(w):
    return w.astype(jnp.bfloat16)


def _pad_rows(w, rows):
    """Zero-pad a (k, n) weight slab to (rows, n)."""
    return jnp.zeros((rows, w.shape[1]), w.dtype).at[:w.shape[0]].set(w)


class CGANPallas:
    """JAX/Pallas re-implementation of the CGAN forward pass (eval mode)."""

    def __init__(self, img_size=16, latent_dim=32, key=jax.random.PRNGKey(42)):
        self.classes = 10
        self.channels = 1
        self.img_size = img_size
        self.latent_dim = latent_dim
        self.img_shape = (self.channels, self.img_size, self.img_size)
        img_pixels = int(np.prod(self.img_shape))

        keys = jax.random.split(key, 12)
        # nn.Embedding(classes, classes): N(0, 1); width zero-padded to EMB_PAD
        # so the bf16 K dim of the first-layer dots is sublane aligned.
        emb_tbl = jax.random.normal(
            keys[0], (self.classes, self.classes), jnp.float32)
        self.label_embedding = jnp.zeros(
            (self.classes, EMB_PAD), jnp.float32).at[:, :self.classes].set(emb_tbl)

        # --- Generator: (latent+classes)->128 ->256(BN) ->512(BN) ->1024(BN)
        #                ->pixels, Tanh
        w1, b1 = _linear_init(keys[1], self.latent_dim + self.classes, 128)
        w2, b2 = _linear_init(keys[2], 128, 256)
        w3, b3 = _linear_init(keys[3], 256, 512)
        w4, b4 = _linear_init(keys[4], 512, 1024)
        w5, b5 = _linear_init(keys[5], 1024, img_pixels)
        # fold eval-mode BN into the linears it follows
        w2, b2 = _fold_bn(w2, b2, *_bn_init(256))
        w3, b3 = _fold_bn(w3, b3, *_bn_init(512))
        w4, b4 = _fold_bn(w4, b4, *_bn_init(1024))
        # split first weight to avoid the concat: torch does cat(emb, z);
        # pad the embedding slab rows 10 -> 16 (padded emb columns are zero).
        w1_emb = _pad_rows(w1[:self.classes], EMB_PAD)
        w1_z = w1[self.classes:]
        self.gen_params = [
            _bf16(w1_emb), _bf16(w1_z), b1,
            _bf16(w2), b2, _bf16(w3), b3, _bf16(w4), b4,
            _bf16(w5), b5,
        ]

        # --- Discriminator: (pixels+classes)->1024 ->512 ->256 ->128 ->1, Sigmoid
        dw1, db1 = _linear_init(keys[6], self.classes + img_pixels, 1024)
        dw2, db2 = _linear_init(keys[7], 1024, 512)
        dw3, db3 = _linear_init(keys[8], 512, 256)
        dw4, db4 = _linear_init(keys[9], 256, 128)
        dw5, db5 = _linear_init(keys[10], 128, 1)
        # split first weight: torch does cat(input.view(B,-1), emb)
        dw1_img = dw1[:img_pixels]
        dw1_emb = _pad_rows(dw1[img_pixels:], EMB_PAD)
        # fuse the activation-free 256->128->1 tail offline (the reference has
        # no LeakyReLU/Dropout between those Linears), pad to 128 lanes.
        w45 = dw4 @ dw5                      # (256, 1)
        b45 = db4 @ dw5 + db5                # (1, 1)
        w45p = jnp.zeros((256, HEAD_PAD), jnp.float32).at[:, :1].set(w45)
        b45p = jnp.zeros((1, HEAD_PAD), jnp.float32).at[:, :1].set(b45)
        self.disc_params = [
            _bf16(dw1_img), _bf16(dw1_emb), db1,
            _bf16(dw2), db2, _bf16(dw3), db3,
            _bf16(w45p), b45p,
        ]

    def forward(self, inp, labels):
        # embedding gather (tiny) stays in JAX; fed to the kernel as bf16
        emb = self.label_embedding[labels].astype(jnp.bfloat16)  # (B, 16)
        if inp.ndim == 2:
            # generator branch: z = cat(embedding(labels), input), split in-kernel
            x = run_generator(emb, inp.astype(jnp.bfloat16), self.gen_params)
            return x.reshape(x.shape[0], *self.img_shape)
        elif inp.ndim == 4:
            # discriminator branch: x = cat(input.view(B,-1), embedding(labels))
            flat = inp.reshape(inp.shape[0], -1).astype(jnp.bfloat16)
            out = run_discriminator(flat, emb, self.disc_params)
            return out[:, :1]  # drop zero-padded lanes of the 1-wide head
        else:
            raise ValueError("input must be 2-D (latent) or 4-D (image)")


# --------------------------------- main ------------------------------------ #

if __name__ == "__main__":
    batch = 8
    img_size = 16
    latent_dim = 32

    model = CGANPallas(img_size=img_size, latent_dim=latent_dim,
                       key=jax.random.PRNGKey(42))

    k1, k2 = jax.random.split(jax.random.PRNGKey(0))
    z = jax.random.normal(k1, (batch, latent_dim), jnp.float32)
    labels = jax.random.randint(k2, (batch,), 0, 10)

    # Generator branch (2-D input).
    imgs = model.forward(z, labels)
    imgs = jax.block_until_ready(imgs)
    assert imgs.shape == (batch, 1, img_size, img_size), imgs.shape
    imgs_f32 = imgs.astype(jnp.float32)
    assert bool(jnp.all(jnp.isfinite(imgs_f32)))
    assert bool(jnp.all((imgs_f32 >= -1.0) & (imgs_f32 <= 1.0)))

    # Discriminator branch (4-D NCHW input).
    scores = model.forward(imgs, labels)
    scores = jax.block_until_ready(scores)
    assert scores.shape == (batch, 1), scores.shape
    assert bool(jnp.all((scores >= 0.0) & (scores <= 1.0)))

    print("KERNEL_OK")
</pallas_src>

<mosaic_0001>
module attributes {stable_mosaic.version = 11 : i64} {
  func.func @_gen_kernel(%arg0: i32, %arg1: memref<8x16xbf16, #tpu.memory_space<vmem>>, %arg2: memref<8x32xbf16, #tpu.memory_space<vmem>>, %arg3: memref<16x128xbf16, #tpu.memory_space<vmem>>, %arg4: memref<32x128xbf16, #tpu.memory_space<vmem>>, %arg5: memref<1x128xf32, #tpu.memory_space<vmem>>, %arg6: memref<128x256xbf16, #tpu.memory_space<vmem>>, %arg7: memref<1x256xf32, #tpu.memory_space<vmem>>, %arg8: memref<256x512xbf16, #tpu.memory_space<vmem>>, %arg9: memref<1x512xf32, #tpu.memory_space<vmem>>, %arg10: memref<512x1024xbf16, #tpu.memory_space<vmem>>, %arg11: memref<1x1024xf32, #tpu.memory_space<vmem>>, %arg12: memref<1024x256xbf16, #tpu.memory_space<vmem>>, %arg13: memref<1x256xf32, #tpu.memory_space<vmem>>, %arg14: memref<8x256xbf16, #tpu.memory_space<vmem>>) attributes {dimension_semantics = [#tpu.dimension_semantics<parallel>], iteration_bounds = array<i64: 1>, scalar_prefetch = 0 : i64, scratch_operands = 0 : i64, tpu.core_type = #tpu.core_type<tc>, window_params = [{transform_indices = @transform_0, window_bounds = array<i64: 8, 16>}, {transform_indices = @transform_1, window_bounds = array<i64: 8, 32>}, {pipeline_mode = #tpu.pipeline_mode<synchronous>, transform_indices = @transform_2, window_bounds = array<i64: 16, 128>}, {pipeline_mode = #tpu.pipeline_mode<synchronous>, transform_indices = @transform_3, window_bounds = array<i64: 32, 128>}, {pipeline_mode = #tpu.pipeline_mode<synchronous>, transform_indices = @transform_4, window_bounds = array<i64: 1, 128>}, {pipeline_mode = #tpu.pipeline_mode<synchronous>, transform_indices = @transform_5, window_bounds = array<i64: 128, 256>}, {pipeline_mode = #tpu.pipeline_mode<synchronous>, transform_indices = @transform_6, window_bounds = array<i64: 1, 256>}, {pipeline_mode = #tpu.pipeline_mode<synchronous>, transform_indices = @transform_7, window_bounds = array<i64: 256, 512>}, {pipeline_mode = #tpu.pipeline_mode<synchronous>, transform_indices = @transform_8, window_bounds = array<i64: 1, 512>}, {pipeline_mode = #tpu.pipeline_mode<synchronous>, transform_indices = @transform_9, window_bounds = array<i64: 512, 1024>}, {pipeline_mode = #tpu.pipeline_mode<synchronous>, transform_indices = @transform_10, window_bounds = array<i64: 1, 1024>}, {pipeline_mode = #tpu.pipeline_mode<synchronous>, transform_indices = @transform_11, window_bounds = array<i64: 1024, 256>}, {pipeline_mode = #tpu.pipeline_mode<synchronous>, transform_indices = @transform_12, window_bounds = array<i64: 1, 256>}, {transform_indices = @transform_13, window_bounds = array<i64: 8, 256>}]} {
    %c0 = arith.constant 0 : index
    %c0_0 = arith.constant 0 : index
    %0 = vector.load %arg1[%c0, %c0_0] : memref<8x16xbf16, #tpu.memory_space<vmem>>, vector<8x16xbf16>
    %c0_1 = arith.constant 0 : index
    %c0_2 = arith.constant 0 : index
    %1 = vector.load %arg3[%c0_1, %c0_2] : memref<16x128xbf16, #tpu.memory_space<vmem>>, vector<16x128xbf16>
    %cst = arith.constant dense<0.000000e+00> : vector<8x128xf32>
    %2 = tpu.matmul %0, %1, %cst {dimension_numbers = #tpu.dot_dimension_numbers<[1], [0], [0], [1], [0, 0, 1, 1], [], []>} : vector<8x16xbf16>, vector<16x128xbf16>, vector<8x128xf32> -> vector<8x128xf32>
    %c0_3 = arith.constant 0 : index
    %c0_4 = arith.constant 0 : index
    %3 = vector.load %arg2[%c0_3, %c0_4] : memref<8x32xbf16, #tpu.memory_space<vmem>>, vector<8x32xbf16>
    %c0_5 = arith.constant 0 : index
    %c0_6 = arith.constant 0 : index
    %4 = vector.load %arg4[%c0_5, %c0_6] : memref<32x128xbf16, #tpu.memory_space<vmem>>, vector<32x128xbf16>
    %cst_7 = arith.constant dense<0.000000e+00> : vector<8x128xf32>
    %5 = tpu.matmul %3, %4, %cst_7 {dimension_numbers = #tpu.dot_dimension_numbers<[1], [0], [0], [1], [0, 0, 1, 1], [], []>} : vector<8x32xbf16>, vector<32x128xbf16>, vector<8x128xf32> -> vector<8x128xf32>
    %6 = arith.addf %2, %5 : vector<8x128xf32>
    %c0_8 = arith.constant 0 : index
    %c0_9 = arith.constant 0 : index
    %7 = vector.load %arg5[%c0_8, %c0_9] : memref<1x128xf32, #tpu.memory_space<vmem>>, vector<1x128xf32>
    %8 = vector.broadcast %7 : vector<1x128xf32> to vector<8x128xf32>
    %9 = arith.addf %6, %8 : vector<8x128xf32>
    %cst_10 = arith.constant 2.000000e-01 : f32
    %10 = vector.broadcast %cst_10 : f32 to vector<8x128xf32>
    %11 = arith.mulf %10, %9 : vector<8x128xf32>
    %12 = arith.maximumf %9, %11 : vector<8x128xf32>
    %13 = arith.truncf %12 : vector<8x128xf32> to vector<8x128xbf16>
    %c0_11 = arith.constant 0 : index
    %c0_12 = arith.constant 0 : index
    %14 = vector.load %arg6[%c0_11, %c0_12] : memref<128x256xbf16, #tpu.memory_space<vmem>>, vector<128x256xbf16>
    %cst_13 = arith.constant dense<0.000000e+00> : vector<8x256xf32>
    %15 = tpu.matmul %13, %14, %cst_13 {dimension_numbers = #tpu.dot_dimension_numbers<[1], [0], [0], [1], [0, 0, 1, 1], [], []>} : vector<8x128xbf16>, vector<128x256xbf16>, vector<8x256xf32> -> vector<8x256xf32>
    %c0_14 = arith.constant 0 : index
    %c0_15 = arith.constant 0 : index
    %16 = vector.load %arg7[%c0_14, %c0_15] : memref<1x256xf32, #tpu.memory_space<vmem>>, vector<1x256xf32>
    %17 = vector.broadcast %16 : vector<1x256xf32> to vector<8x256xf32>
    %18 = arith.addf %15, %17 : vector<8x256xf32>
    %cst_16 = arith.constant 2.000000e-01 : f32
    %19 = vector.broadcast %cst_16 : f32 to vector<8x256xf32>
    %20 = arith.mulf %19, %18 : vector<8x256xf32>
    %21 = arith.maximumf %18, %20 : vector<8x256xf32>
    %22 = arith.truncf %21 : vector<8x256xf32> to vector<8x256xbf16>
    %c0_17 = arith.constant 0 : index
    %c0_18 = arith.constant 0 : index
    %23 = vector.load %arg8[%c0_17, %c0_18] : memref<256x512xbf16, #tpu.memory_space<vmem>>, vector<256x512xbf16>
    %cst_19 = arith.constant dense<0.000000e+00> : vector<8x512xf32>
    %24 = tpu.matmul %22, %23, %cst_19 {dimension_numbers = #tpu.dot_dimension_numbers<[1], [0], [0], [1], [0, 0, 1, 1], [], []>} : vector<8x256xbf16>, vector<256x512xbf16>, vector<8x512xf32> -> vector<8x512xf32>
    %c0_20 = arith.constant 0 : index
    %c0_21 = arith.constant 0 : index
    %25 = vector.load %arg9[%c0_20, %c0_21] : memref<1x512xf32, #tpu.memory_space<vmem>>, vector<1x512xf32>
    %26 = vector.broadcast %25 : vector<1x512xf32> to vector<8x512xf32>
    %27 = arith.addf %24, %26 : vector<8x512xf32>
    %cst_22 = arith.constant 2.000000e-01 : f32
    %28 = vector.broadcast %cst_22 : f32 to vector<8x512xf32>
    %29 = arith.mulf %28, %27 : vector<8x512xf32>
    %30 = arith.maximumf %27, %29 : vector<8x512xf32>
    %31 = arith.truncf %30 : vector<8x512xf32> to vector<8x512xbf16>
    %c0_23 = arith.constant 0 : index
    %c0_24 = arith.constant 0 : index
    %32 = vector.load %arg10[%c0_23, %c0_24] : memref<512x1024xbf16, #tpu.memory_space<vmem>>, vector<512x1024xbf16>
    %cst_25 = arith.constant dense<0.000000e+00> : vector<8x1024xf32>
    %33 = tpu.matmul %31, %32, %cst_25 {dimension_numbers = #tpu.dot_dimension_numbers<[1], [0], [0], [1], [0, 0, 1, 1], [], []>} : vector<8x512xbf16>, vector<512x1024xbf16>, vector<8x1024xf32> -> vector<8x1024xf32>
    %c0_26 = arith.constant 0 : index
    %c0_27 = arith.constant 0 : index
    %34 = vector.load %arg11[%c0_26, %c0_27] : memref<1x1024xf32, #tpu.memory_space<vmem>>, vector<1x1024xf32>
    %35 = vector.broadcast %34 : vector<1x1024xf32> to vector<8x1024xf32>
    %36 = arith.addf %33, %35 : vector<8x1024xf32>
    %cst_28 = arith.constant 2.000000e-01 : f32
    %37 = vector.broadcast %cst_28 : f32 to vector<8x1024xf32>
    %38 = arith.mulf %37, %36 : vector<8x1024xf32>
    %39 = arith.maximumf %36, %38 : vector<8x1024xf32>
    %40 = arith.truncf %39 : vector<8x1024xf32> to vector<8x1024xbf16>
    %c0_29 = arith.constant 0 : index
    %c0_30 = arith.constant 0 : index
    %41 = vector.load %arg12[%c0_29, %c0_30] : memref<1024x256xbf16, #tpu.memory_space<vmem>>, vector<1024x256xbf16>
    %cst_31 = arith.constant dense<0.000000e+00> : vector<8x256xf32>
    %42 = tpu.matmul %40, %41, %cst_31 {dimension_numbers = #tpu.dot_dimension_numbers<[1], [0], [0], [1], [0, 0, 1, 1], [], []>} : vector<8x1024xbf16>, vector<1024x256xbf16>, vector<8x256xf32> -> vector<8x256xf32>
    %c0_32 = arith.constant 0 : index
    %c0_33 = arith.constant 0 : index
    %43 = vector.load %arg13[%c0_32, %c0_33] : memref<1x256xf32, #tpu.memory_space<vmem>>, vector<1x256xf32>
    %44 = vector.broadcast %43 : vector<1x256xf32> to vector<8x256xf32>
    %45 = arith.addf %42, %44 : vector<8x256xf32>
    %46 = math.tanh %45 : vector<8x256xf32>
    %47 = arith.truncf %46 : vector<8x256xf32> to vector<8x256xbf16>
    %c0_34 = arith.constant 0 : index
    %c0_35 = arith.constant 0 : index
    %48 = vector.load %arg14[%c0_34, %c0_35] : memref<8x256xbf16, #tpu.memory_space<vmem>>, vector<8x256xbf16>
    tpu.vector_store %arg14[%c0_34, %c0_35], %47 {strides = array<i32>} : memref<8x256xbf16, #tpu.memory_space<vmem>>, vector<8x256xbf16>,
    return
  }
  func.func @transform_0(%arg0: i32) -> (i32, i32) {
    %c0_i32 = arith.constant 0 : i32
    %c0_i32_0 = arith.constant 0 : i32
    return %arg0, %c0_i32 : i32, i32
  }
  func.func @transform_1(%arg0: i32) -> (i32, i32) {
    %c0_i32 = arith.constant 0 : i32
    %c0_i32_0 = arith.constant 0 : i32
    return %arg0, %c0_i32 : i32, i32
  }
  func.func @transform_2(%arg0: i32) -> (i32, i32) {
    %c0_i32 = arith.constant 0 : i32
    %c0_i32_0 = arith.constant 0 : i32
    %c0_i32_1 = arith.constant 0 : i32
    return %c0_i32, %c0_i32_0 : i32, i32
  }
  func.func @transform_3(%arg0: i32) -> (i32, i32) {
    %c0_i32 = arith.constant 0 : i32
    %c0_i32_0 = arith.constant 0 : i32
    %c0_i32_1 = arith.constant 0 : i32
    return %c0_i32, %c0_i32_0 : i32, i32
  }
  func.func @transform_4(%arg0: i32) -> (i32, i32) {
    %c0_i32 = arith.constant 0 : i32
    %c0_i32_0 = arith.constant 0 : i32
    %c0_i32_1 = arith.constant 0 : i32
    return %c0_i32, %c0_i32_0 : i32, i32
  }
  func.func @transform_5(%arg0: i32) -> (i32, i32) {
    %c0_i32 = arith.constant 0 : i32
    %c0_i32_0 = arith.constant 0 : i32
    %c0_i32_1 = arith.constant 0 : i32
    return %c0_i32, %c0_i32_0 : i32, i32
  }
  func.func @transform_6(%arg0: i32) -> (i32, i32) {
    %c0_i32 = arith.constant 0 : i32
    %c0_i32_0 = arith.constant 0 : i32
    %c0_i32_1 = arith.constant 0 : i32
    return %c0_i32, %c0_i32_0 : i32, i32
  }
  func.func @transform_7(%arg0: i32) -> (i32, i32) {
    %c0_i32 = arith.constant 0 : i32
    %c0_i32_0 = arith.constant 0 : i32
    %c0_i32_1 = arith.constant 0 : i32
    return %c0_i32, %c0_i32_0 : i32, i32
  }
  func.func @transform_8(%arg0: i32) -> (i32, i32) {
    %c0_i32 = arith.constant 0 : i32
    %c0_i32_0 = arith.constant 0 : i32
    %c0_i32_1 = arith.constant 0 : i32
    return %c0_i32, %c0_i32_0 : i32, i32
  }
  func.func @transform_9(%arg0: i32) -> (i32, i32) {
    %c0_i32 = arith.constant 0 : i32
    %c0_i32_0 = arith.constant 0 : i32
    %c0_i32_1 = arith.constant 0 : i32
    return %c0_i32, %c0_i32_0 : i32, i32
  }
  func.func @transform_10(%arg0: i32) -> (i32, i32) {
    %c0_i32 = arith.constant 0 : i32
    %c0_i32_0 = arith.constant 0 : i32
    %c0_i32_1 = arith.constant 0 : i32
    return %c0_i32, %c0_i32_0 : i32, i32
  }
  func.func @transform_11(%arg0: i32) -> (i32, i32) {
    %c0_i32 = arith.constant 0 : i32
    %c0_i32_0 = arith.constant 0 : i32
    %c0_i32_1 = arith.constant 0 : i32
    return %c0_i32, %c0_i32_0 : i32, i32
  }
  func.func @transform_12(%arg0: i32) -> (i32, i32) {
    %c0_i32 = arith.constant 0 : i32
    %c0_i32_0 = arith.constant 0 : i32
    %c0_i32_1 = arith.constant 0 : i32
    return %c0_i32, %c0_i32_0 : i32, i32
  }
  func.func @transform_13(%arg0: i32) -> (i32, i32) {
    %c0_i32 = arith.constant 0 : i32
    %c0_i32_0 = arith.constant 0 : i32
    return %arg0, %c0_i32 : i32, i32
  }
}

</mosaic_0001>

<bundles_post_ra>
// kernel: tpu_custom_call.1
= control target key start
LH: loop header
LB: loop body
LE: loop exit
PB: predicated region body
PF: predicated region fallthrough
CT: control target
= control target key end

     0   :  { %18 = vsyncpa [#allocation3], 0  ;;  %s5240_s0 = inlined_call_operand.hbm [shape: bf16[8,16], index: 0, kind: input, shape index: {}]   ;;  %s5241_s1 = inlined_call_operand.hbm [shape: bf16[8,32], index: 1, kind: input, shape index: {}]   ;;  %s5242_s2 = inlined_call_operand.hbm [shape: bf16[16,128], index: 2, kind: input, shape index: {}]   ;;  %s5243_s3 = inlined_call_operand.hbm [shape: bf16[32,128], index: 3, kind: input, shape index: {}]   ;;  %s5244_s4 = inlined_call_operand.vmem [shape: f32[1,128], index: 4, kind: input, shape index: {}]   ;;  %s5245_s5 = inlined_call_operand.hbm [shape: bf16[128,256], index: 5, kind: input, shape index: {}]   ;;  %s5246_s6 = inlined_call_operand.vmem [shape: f32[1,256], index: 6, kind: input, shape index: {}]   ;;  %s5247_s7 = inlined_call_operand.hbm [shape: bf16[256,512], index: 7, kind: input, shape index: {}]   ;;  %s5248_s8 = inlined_call_operand.vmem [shape: f32[1,512], index: 8, kind: input, shape index: {}]   ;;  %s5249_s9 = inlined_call_operand.hbm [shape: bf16[512,1024], index: 9, kind: input, shape index: {}]   ;;  %s5250_s10 = inlined_call_operand.vmem [shape: f32[1,1024], index: 10, kind: input, shape index: {}]   ;;  %s5251_s11 = inlined_call_operand.hbm [shape: bf16[1024,256], index: 11, kind: input, shape index: {}]   ;;  %s5252_s12 = inlined_call_operand.vmem [shape: f32[1,256], index: 12, kind: input, shape index: {}]   ;;  %s5253_s13 = inlined_call_operand.hbm [shape: bf16[8,256], index: 13, kind: output, shape index: {}]  }
   0x1   :  { %19 = vsyncpa [#allocation6], 0 }
   0x2   :  { %20 = vsyncpa [#allocation9], 0 }
   0x3   :  { %21 = vsyncpa [#allocation12], 0 }
   0x4   :  { %22 = vsyncpa [#allocation15], 0 }
   0x5   :  { %23 = vsyncpa [#allocation4], 0  ;;  %s4911_s25 = smov [#allocation5]   ;;  %s4701_s29 = scalar_lea.hbm %s5241_s1, 64 }
   0x6   :  { %s40_s26 = sshll.u32 %s4911_s25, 4  ;;  %p4702_p0 = scmp.ne.s32.totalorder %s5241_s1, %s4701_s29  ;;  %s41_s26 = int_to_ptr.vmem [resolvable:$true] %s40_s26 }
   0x7   :  { %p4705_p1 = scmp.lt.u32.totalorder %s4701_s29, %s5241_s1 }
   0x9   :  { %p4707_p2 = pnand %p4705_p1, %p4702_p0 }
   0xb   :  { %4710 = shalt.err (!%p4707_p2)
}
   0xc   :  { %s4711_s17 = scalar_lea.vmem %s41_s26, 64  ;;  %p4716_p4 = scmp.lt.s32.totalorder %s41_s26, %s41_s26 }
   0xd   :  { %p4712_p3 = scmp.ne.s32.totalorder %s41_s26, %s4711_s17  ;;  %p4717_p5 = scmp.lt.s32.totalorder %s4711_s17, %s4711_s17 }
   0xf   :  { %p4718_p6 = por %p4717_p5, %p4716_p4 }
  0x11   :  { %p4719_p7 = pnand %p4718_p6, %p4712_p3 }
  0x13   :  { %4722 = shalt.err (!%p4719_p7)
}
  0x14   :  { %43 = dma.hbm_to_vmem [thread:$0]  %s5241_s1, 64, %s41_s26, [#allocation6]  }
  0x15   :  { %s4912_s20 = smov [#allocation8]   ;;  %s4913_s22 = smov [#allocation11]  }
  0x16   :  { %s61_s21 = sshll.u32 %s4912_s20, 4  ;;  %s89_s23 = sshll.u32 %s4913_s22, 4  ;;  %s62_s21 = int_to_ptr.vmem [resolvable:$true] %s61_s21  ;;  %s90_s23 = int_to_ptr.vmem [resolvable:$true] %s89_s23 }
  0x17   :  { %s4723_s27 = scalar_lea.hbm %s5243_s3, 256 }
  0x18   :  { %p4724_p8 = scmp.ne.s32.totalorder %s5243_s3, %s4723_s27  ;;  %p4727_p9 = scmp.lt.u32.totalorder %s4723_s27, %s5243_s3 }
  0x1a   :  { %p4729_p10 = pnand %p4727_p9, %p4724_p8 }
  0x1c   :  { %4732 = shalt.err (!%p4729_p10)
}
  0x1d   :  { %s4733_s1 = scalar_lea.vmem %s62_s21, 256  ;;  %p4738_p12 = scmp.lt.s32.totalorder %s62_s21, %s62_s21 }
  0x1e   :  { %p4734_p11 = scmp.ne.s32.totalorder %s62_s21, %s4733_s1  ;;  %p4739_p13 = scmp.lt.s32.totalorder %s4733_s1, %s4733_s1 }
  0x20   :  { %p4740_p0 = por %p4739_p13, %p4738_p12 }
  0x22   :  { %p4741_p1 = pnand %p4740_p0, %p4734_p11 }
  0x24   :  { %4744 = shalt.err (!%p4741_p1)
}
  0x25   :  { %s4914_s26 = smov 64   ;;  %s4915_s15 = smov 4  }
  0x26   :  { %67 = dma.hbm_to_vmem [thread:$0]  %s5243_s3, 256, %s62_s21, [#allocation9], %s4914_s26, %s4914_s26, %s4915_s15  }
  0x27   :  { %s4745_s20 = scalar_lea.hbm %s5247_s7, 8192 }
  0x28   :  { %p4746_p2 = scmp.ne.s32.totalorder %s5247_s7, %s4745_s20  ;;  %p4749_p3 = scmp.lt.u32.totalorder %s4745_s20, %s5247_s7 }
  0x2a   :  { %p4751_p4 = pnand %p4749_p3, %p4746_p2 }
  0x2c   :  { %4754 = shalt.err (!%p4751_p4)
}
  0x2d   :  { %s4755_s28 = scalar_lea.vmem %s90_s23, 8192  ;;  %p4760_p6 = scmp.lt.s32.totalorder %s90_s23, %s90_s23 }
  0x2e   :  { %p4756_p5 = scmp.ne.s32.totalorder %s90_s23, %s4755_s28  ;;  %p4761_p7 = scmp.lt.s32.totalorder %s4755_s28, %s4755_s28 }
  0x30   :  { %p4762_p8 = por %p4761_p7, %p4760_p6 }
  0x32   :  { %p4763_p9 = pnand %p4762_p8, %p4756_p5 }
  0x34   :  { %4766 = shalt.err (!%p4763_p9)
}
  0x35   :  { %s4916_s3 = smov 256   ;;  %s4917_s21 = smov 16  }
  0x36   :  { %95 = dma.hbm_to_vmem [thread:$0]  %s5247_s7, 8192, %s90_s23, [#allocation12], %s4916_s3, %s4916_s3, %s4917_s21  }
  0x37   :  { %s4918_s14 = smov [#allocation2]   ;;  %s4919_s16 = smov [#allocation7]  }
  0x38   :  { %s30_s1 = sshll.u32 %s4918_s14, 4  ;;  %s49_s17 = sshll.u32 %s4919_s16, 4  ;;  %s31_s1 = int_to_ptr.vmem [resolvable:$true] %s30_s1  ;;  %s50_s17 = int_to_ptr.vmem [resolvable:$true] %s49_s17 }
  0x39   :  { %s4767_s20 = scalar_lea.hbm %s5240_s0, 64 }
  0x3a   :  { %p4768_p10 = scmp.ne.s32.totalorder %s5240_s0, %s4767_s20  ;;  %p4771_p11 = scmp.lt.u32.totalorder %s4767_s20, %s5240_s0 }
  0x3c   :  { %p4773_p12 = pnand %p4771_p11, %p4768_p10 }
  0x3e   :  { %4776 = shalt.err (!%p4773_p12)
}
  0x3f   :  { %s4777_s7 = scalar_lea.vmem %s31_s1, 64  ;;  %p4782_p0 = scmp.lt.s32.totalorder %s31_s1, %s31_s1 }
  0x40   :  { %p4778_p13 = scmp.ne.s32.totalorder %s31_s1, %s4777_s7  ;;  %p4783_p1 = scmp.lt.s32.totalorder %s4777_s7, %s4777_s7 }
  0x42   :  { %p4784_p2 = por %p4783_p1, %p4782_p0 }
  0x44   :  { %p4785_p3 = pnand %p4784_p2, %p4778_p13 }
  0x46   :  { %4788 = shalt.err (!%p4785_p3)
}
  0x47   :  { %33 = dma.hbm_to_vmem [thread:$0]  %s5240_s0, 64, %s31_s1, [#allocation3]  }
  0x48   :  { %s4789_s29 = scalar_lea.hbm %s5242_s2, 128 }
  0x49   :  { %p4790_p4 = scmp.ne.s32.totalorder %s5242_s2, %s4789_s29  ;;  %p4793_p5 = scmp.lt.u32.totalorder %s4789_s29, %s5242_s2 }
  0x4b   :  { %p4795_p6 = pnand %p4793_p5, %p4790_p4 }
  0x4d   :  { %4798 = shalt.err (!%p4795_p6)
}
  0x4e   :  { %s4799_s19 = scalar_lea.vmem %s50_s17, 128  ;;  %p4804_p8 = scmp.lt.s32.totalorder %s50_s17, %s50_s17 }
  0x4f   :  { %p4800_p7 = scmp.ne.s32.totalorder %s50_s17, %s4799_s19  ;;  %p4805_p9 = scmp.lt.s32.totalorder %s4799_s19, %s4799_s19 }
  0x51   :  { %p4806_p10 = por %p4805_p9, %p4804_p8 }
  0x53   :  { %p4807_p11 = pnand %p4806_p10, %p4800_p7 }
  0x55   :  { %4810 = shalt.err (!%p4807_p11)
}
  0x56   :  { %55 = dma.hbm_to_vmem [thread:$0]  %s5242_s2, 128, %s50_s17, [#allocation6], %s4914_s26, %s4914_s26, %s4915_s15  }
  0x57   :  { %s4920_s20 = smov [#allocation10]   ;;  %s4811_s27 = scalar_lea.hbm %s5245_s5, 2048 }
  0x58   :  { %s75_s22 = sshll.u32 %s4920_s20, 4  ;;  %p4812_p12 = scmp.ne.s32.totalorder %s5245_s5, %s4811_s27  ;;  %s76_s22 = int_to_ptr.vmem [resolvable:$true] %s75_s22 }
  0x59   :  { %p4815_p13 = scmp.lt.u32.totalorder %s4811_s27, %s5245_s5 }
  0x5b   :  { %p4817_p0 = pnand %p4815_p13, %p4812_p12 }
  0x5d   :  { %4820 = shalt.err (!%p4817_p0)
}
  0x5e   :  { %s4821_s21 = scalar_lea.vmem %s76_s22, 2048  ;;  %p4826_p2 = scmp.lt.s32.totalorder %s76_s22, %s76_s22 }
  0x5f   :  { %p4822_p1 = scmp.ne.s32.totalorder %s76_s22, %s4821_s21  ;;  %p4827_p3 = scmp.lt.s32.totalorder %s4821_s21, %s4821_s21 }
  0x61   :  { %p4828_p4 = por %p4827_p3, %p4826_p2 }
  0x63   :  { %p4829_p5 = pnand %p4828_p4, %p4822_p1 }
  0x65   :  { %4832 = shalt.err (!%p4829_p5)
}
  0x66   :  { %s4921_s2 = smov 128   ;;  %s4922_s26 = smov 8  }
  0x67   :  { %81 = dma.hbm_to_vmem [thread:$0]  %s5245_s5, 2048, %s76_s22, [#allocation9], %s4921_s2, %s4921_s2, %s4922_s26  }
  0x68   :  { %s4923_s29 = smov [#allocation13]   ;;  %s4833_s18 = scalar_lea.hbm %s5249_s9, 32768 }
  0x69   :  { %s103_s30 = sshll.u32 %s4923_s29, 4  ;;  %p4834_p6 = scmp.ne.s32.totalorder %s5249_s9, %s4833_s18  ;;  %s104_s30 = int_to_ptr.vmem [resolvable:$true] %s103_s30 }
  0x6a   :  { %p4837_p7 = scmp.lt.u32.totalorder %s4833_s18, %s5249_s9 }
  0x6c   :  { %p4839_p8 = pnand %p4837_p7, %p4834_p6 }
  0x6e   :  { %4842 = shalt.err (!%p4839_p8)
}
  0x6f   :  { %s4843_s24 = scalar_lea.vmem %s104_s30, 32768  ;;  %p4848_p10 = scmp.lt.s32.totalorder %s104_s30, %s104_s30 }
  0x70   :  { %p4844_p9 = scmp.ne.s32.totalorder %s104_s30, %s4843_s24  ;;  %p4849_p11 = scmp.lt.s32.totalorder %s4843_s24, %s4843_s24 }
  0x72   :  { %p4850_p12 = por %p4849_p11, %p4848_p10 }
  0x74   :  { %p4851_p13 = pnand %p4850_p12, %p4844_p9 }
  0x76   :  { %4854 = shalt.err (!%p4851_p13)
}
  0x77   :  { %s4924_s5 = smov 512   ;;  %s4925_s22 = smov 32  }
  0x78   :  { %109 = dma.hbm_to_vmem [thread:$0]  %s5249_s9, 32768, %s104_s30, [#allocation12], %s4924_s5, %s4924_s5, %s4925_s22  }
  0x79   :  { %s4926_s7 = smov [#allocation14]   ;;  %s4855_s21 = scalar_lea.hbm %s5251_s11, 16384 }
  0x7a   :  { %s117_s23 = sshll.u32 %s4926_s7, 4  ;;  %p4856_p0 = scmp.ne.s32.totalorder %s5251_s11, %s4855_s21  ;;  %s118_s23 = int_to_ptr.vmem [resolvable:$true] %s117_s23 }
  0x7b   :  { %p4859_p1 = scmp.lt.u32.totalorder %s4855_s21, %s5251_s11 }
  0x7d   :  { %p4861_p2 = pnand %p4859_p1, %p4856_p0 }
  0x7f   :  { %4864 = shalt.err (!%p4861_p2)
}
  0x80   :  { %s4865_s16 = scalar_lea.vmem %s118_s23, 16384  ;;  %p4870_p4 = scmp.lt.s32.totalorder %s118_s23, %s118_s23 }
  0x81   :  { %p4866_p3 = scmp.ne.s32.totalorder %s118_s23, %s4865_s16  ;;  %p4871_p5 = scmp.lt.s32.totalorder %s4865_s16, %s4865_s16 }
  0x83   :  { %p4872_p6 = por %p4871_p5, %p4870_p4 }
  0x85   :  { %p4873_p7 = pnand %p4872_p6, %p4866_p3 }
  0x87   :  { %4876 = shalt.err (!%p4873_p7)
}
  0x88   :  { %123 = dma.hbm_to_vmem [thread:$0]  %s5251_s11, 16384, %s118_s23, [#allocation15], %s4921_s2, %s4921_s2, %s4922_s26  }
  0x89   :  { %4899 = dma.done.wait [#allocation3], 64  }
  0x8a   :  { %4900 = vsyncadd [#allocation3], 4294967232 }
  0x8b   :  { %4901 = dma.done.wait [#allocation6], 192  }
  0x8c   :  { %4902 = vsyncadd [#allocation6], 4294967104 }
  0x8d   :  { %4903 = dma.done.wait [#allocation9], 2304  }
  0x8e   :  { %4904 = vsyncadd [#allocation9], 4294964992 }
  0x8f   :  { %4905 = dma.done.wait [#allocation12], 40960  }
  0x90   :  { %4906 = vsyncadd [#allocation12], 4294926336 }
  0x91   :  { %4907 = dma.done.wait [#allocation15], 16384  }
  0x92   :  { %4908 = vsyncadd [#allocation15], 4294950912  ;;  %v4927_v0 = vmov 0.0   ;;  %vm4928_vm0 = vmmov 0   ;;  %v4382_v1 = vld [vmem:[#allocation8] sm:$0xff]   ;;  %v4383_v2 = vld [vmem:[#allocation8 + $0x8] sm:$0xff]  }
  0x93   :  { %4312 = vmatprep.subr.bf16.mxu0 %v4927_v0  ;;  %4316 = vmatprep.mubr.msk.bf16.mxu0 %vm4928_vm0, %v4927_v0  ;;  %v154_v3 = vld [vmem:[#allocation5] sm:$0xf]  ;;  %v4387_v5 = vld [vmem:[#allocation10] ss:$8 sps:$4 sm:$0xff]   ;;  %v4388_v6 = vld [vmem:[#allocation10 + $0x14] ss:$8 sps:$4 sm:$0xff]  }
  0x94   :  { %4313 = vmatpush3.bf16.msra.mxu0 %v4382_v1  ;;  %v4385_v4 = vld [vmem:[#allocation10 + $0x4] ss:$8 sps:$4 sm:$0xff]   ;;  %vm171_vm1 = vcmask 261120   ;;  %v4390_v8 = vld [vmem:[#allocation10 + $0x10] ss:$8 sps:$4 sm:$0xff]   ;;  %vm221_vm2 = vcmask 130048  }
  0x95   :  { %4314 = vmatprep.subr.bf16.mxu0 %v4927_v0  ;;  %v4384_v7 = vld [vmem:[#allocation7] sm:$0xff]   ;;  %384 = vmatprep.subr.bf16.mxu1 %v4385_v4  ;;  %v4394_v11 = vld [vmem:[#allocation10 + $0x34] ss:$8 sps:$4 sm:$0xff]   ;;  %v151_v12 = vld [vmem:[#allocation2] sm:$0xf]  ;;  %v4929_v22 = vmov 0  }
  0x96   :  { %385 = vmatpush1.bf16.msra.mxu1 %v4387_v5  ;;  %v4391_v9 = vld [vmem:[#allocation10 + $0x24] ss:$8 sps:$4 sm:$0xff]   ;;  %v4393_v10 = vld [vmem:[#allocation10 + $0x20] ss:$8 sps:$4 sm:$0xff]   ;;  %v4396_v13 = vld [vmem:[#allocation10 + $0x30] ss:$8 sps:$4 sm:$0xff]   ;;  %416 = vmatprep.mubr.bf16.mxu1 %v4929_v22 }
  0x97   :  { %386 = vmatprep.subr.bf16.mxu1 %v4388_v6  ;;  %v4397_v14 = vld [vmem:[#allocation10 + $0x44] ss:$8 sps:$4 sm:$0xff]   ;;  %v4399_v15 = vld [vmem:[#allocation10 + $0x40] ss:$8 sps:$4 sm:$0xff]   ;;  %v4400_v16 = vld [vmem:[#allocation10 + $0x54] ss:$8 sps:$4 sm:$0xff]   ;;  %v294_v6 = vlaneseq }
  0x98   :  { %4315 = vmatpush3.bf16.msra.mxu0 %v4383_v2  ;;  %v4402_v17 = vld [vmem:[#allocation10 + $0x50] ss:$8 sps:$4 sm:$0xff]   ;;  %v4403_v18 = vld [vmem:[#allocation10 + $0x64] ss:$8 sps:$4 sm:$0xff]   ;;  %v4405_v19 = vld [vmem:[#allocation10 + $0x60] ss:$8 sps:$4 sm:$0xff]  }
  0x99   :  { %4320 = vmatprep.subr.bf16.mxu0 %v4927_v0  ;;  %v4406_v20 = vld [vmem:[#allocation10 + $0x74] ss:$8 sps:$4 sm:$0xff]   ;;  %v4408_v21 = vld [vmem:[#allocation10 + $0x70] ss:$8 sps:$4 sm:$0xff]   ;;  %s4930_s1 = smov [#allocation16]  }
  0x9a   :  { %387 = vmatpush1.bf16.msra.mxu1 %v4390_v8  ;;  %v4411_v23 = vld [vmem:[#allocation11 + $0x4] ss:$16 sps:$4 sm:$0xff]   ;;  %v3840_v29 = vld [vmem:[%s5244_s4] ss:$0 sm:$0xff]  ;;  %v4409_v37 = vld [vmem:[#allocation11] ss:$16 sps:$4 sm:$0xff]  }
  0x9b   :  { %4317 = vmatmul.mubr.msk.bf16.vlgmr.msra.gmra.mrb[0].mxu0 %vm171_vm1, %v154_v3  ;;  %388 = vmatprep.subr.bf16.mxu1 %v4391_v9  ;;  %v4414_v39 = vld [vmem:[#allocation11 + $0x24] ss:$16 sps:$4 sm:$0xff]   ;;  %v4412_v40 = vld [vmem:[#allocation11 + $0x20] ss:$16 sps:$4 sm:$0xff]   ;;  %v4459_v5 = vld [vmem:[#allocation11 + $0xc] ss:$16 sps:$4 sm:$0xff]  }
  0x9c   :  { %4321 = vmatpush3.bf16.msra.mxu0 %v4384_v7  ;;  %4322 = vmatprep.mubr.msk.bf16.mxu0 %vm4928_vm0, %v4927_v0  ;;  %v4417_v41 = vld [vmem:[#allocation11 + $0x44] ss:$16 sps:$4 sm:$0xff]   ;;  %v4415_v42 = vld [vmem:[#allocation11 + $0x40] ss:$16 sps:$4 sm:$0xff]   ;;  %v5114_v7 = vshrl.u32 %v294_v6, 7  ;;  %s3822_s20 = sshll.u32 %s4930_s1, 4  ;;  %s3823_s20 = int_to_ptr.vmem [resolvable:$true] %s3822_s20 }
  0x9d   :  { %v4420_v43 = vld [vmem:[#allocation11 + $0x64] ss:$16 sps:$4 sm:$0xff]   ;;  %v4418_v44 = vld [vmem:[#allocation11 + $0x60] ss:$16 sps:$4 sm:$0xff]   ;;  %v292_v9 = vld [vmem:[%s5246_s6] sm:$0x3]  ;;  %p4882_p9 = scmp.lt.s32.totalorder %s3823_s20, %s3823_s20 }
  0x9e   :  { %389 = vmatpush1.bf16.msra.mxu1 %v4393_v10  ;;  %v4423_v45 = vld [vmem:[#allocation11 + $0x84] ss:$16 sps:$4 sm:$0xff]   ;;  %v4421_v46 = vld [vmem:[#allocation11 + $0x80] ss:$16 sps:$4 sm:$0xff]   ;;  %v5117_v8 = vsub.s32 0, %v5114_v7  ;;  %v5123_v10 = vsub.s32 1, %v5114_v7 }
  0x9f   :  { %390 = vmatprep.subr.bf16.mxu1 %v4394_v11  ;;  %v4426_v47 = vld [vmem:[#allocation11 + $0xa4] ss:$16 sps:$4 sm:$0xff]   ;;  %v4424_v48 = vld [vmem:[#allocation11 + $0xa0] ss:$16 sps:$4 sm:$0xff]  }
  0xa0   :  { %v4429_v49 = vld [vmem:[#allocation11 + $0xc4] ss:$16 sps:$4 sm:$0xff]   ;;  %v4427_v50 = vld [vmem:[#allocation11 + $0xc0] ss:$16 sps:$4 sm:$0xff]   ;;  %v297_v11 = vrot.slane %v292_v9, %v5117_v8 }
  0xa1   :  { %v4432_v51 = vld [vmem:[#allocation11 + $0xe4] ss:$16 sps:$4 sm:$0xff]   ;;  %v4430_v52 = vld [vmem:[#allocation11 + $0xe0] ss:$16 sps:$4 sm:$0xff]  }
  0xa2   :  { %391 = vmatpush1.bf16.msra.mxu1 %v4396_v13  ;;  %v4435_v53 = vld [vmem:[#allocation11 + $0x104] ss:$16 sps:$4 sm:$0xff]   ;;  %v4433_v54 = vld [vmem:[#allocation11 + $0x100] ss:$16 sps:$4 sm:$0xff]  }
  0xa3   :  { %4323 = vmatmul.mubr.msk.bf16.vlgmr.msra.gmra.mrb[4].mxu0 %vm221_vm2, %v151_v12  ;;  %392 = vmatprep.subr.bf16.mxu1 %v4397_v14  ;;  %v4438_v55 = vld [vmem:[#allocation11 + $0x124] ss:$16 sps:$4 sm:$0xff]   ;;  %v4436_v56 = vld [vmem:[#allocation11 + $0x120] ss:$16 sps:$4 sm:$0xff]   ;;  %v301_v12 = vrot.slane %v292_v9, %v5123_v10 }
  0xa4   :  { %v4441_v57 = vld [vmem:[#allocation11 + $0x144] ss:$16 sps:$4 sm:$0xff]   ;;  %v4439_v58 = vld [vmem:[#allocation11 + $0x140] ss:$16 sps:$4 sm:$0xff]  }
  0xa5   :  { %v4444_v59 = vld [vmem:[#allocation11 + $0x164] ss:$16 sps:$4 sm:$0xff]   ;;  %v4442_v60 = vld [vmem:[#allocation11 + $0x160] ss:$16 sps:$4 sm:$0xff]  }
  0xa6   :  { %393 = vmatpush1.bf16.msra.mxu1 %v4399_v15  ;;  %v4447_v61 = vld [vmem:[#allocation11 + $0x184] ss:$16 sps:$4 sm:$0xff]   ;;  %v4445_v62 = vld [vmem:[#allocation11 + $0x180] ss:$16 sps:$4 sm:$0xff]  }
  0xa7   :  { %394 = vmatprep.subr.bf16.mxu1 %v4400_v16  ;;  %v4450_v63 = vld [vmem:[#allocation11 + $0x1a4] ss:$16 sps:$4 sm:$0xff]   ;;  %v4448_v0 = vld [vmem:[#allocation11 + $0x1a0] ss:$16 sps:$4 sm:$0xff]  }
  0xa8   :  { %v4453_v1 = vld [vmem:[#allocation11 + $0x1c4] ss:$16 sps:$4 sm:$0xff]   ;;  %v4451_v2 = vld [vmem:[#allocation11 + $0x1c0] ss:$16 sps:$4 sm:$0xff]  }
  0xa9   :  { %v4456_v3 = vld [vmem:[#allocation11 + $0x1e4] ss:$16 sps:$4 sm:$0xff]   ;;  %v4454_v4 = vld [vmem:[#allocation11 + $0x1e0] ss:$16 sps:$4 sm:$0xff]  }
  0xaa   :  { %395 = vmatpush1.bf16.msra.mxu1 %v4402_v17  ;;  %v963_v9 = vld [vmem:[#allocation13 + $0x100] sm:$0xff] }
  0xab   :  { %396 = vmatprep.subr.bf16.mxu1 %v4403_v18 }
  0xae   :  { %397 = vmatpush1.bf16.msra.mxu1 %v4405_v19 }
  0xaf   :  { %398 = vmatprep.subr.bf16.mxu1 %v4406_v20 }
  0xb2   :  { %399 = vmatpush1.bf16.msra.mxu1 %v4408_v21 }
  0xb3   :  { %837 = vmatprep.subr.bf16.mxu1 %v4411_v23 }
 0x16e   :  { %v209_v24 = vpop.f32.mrb[0].mxu0 }
 0x16f   :  { %v4318_v25 = vpop.f32.mrb[1].mxu0 }
 0x170   :  { %v212_v26 = vpop.f32.mrb[2].mxu0 }
 0x171   :  { %v4319_v27 = vpop.f32.mrb[3].mxu0  ;;  %v4462_v26 = vld [vmem:[#allocation11 + $0x2c] ss:$16 sps:$4 sm:$0xff]  }
 0x172   :  { %v4460_v27 = vld [vmem:[#allocation11 + $0x28] ss:$16 sps:$4 sm:$0xff]  }
 0x176   :  { %v259_v28 = vpop.f32.mrb[4].mxu0 }
 0x177   :  { %v260_v30 = vadd.f32 %v259_v28, %v209_v24  ;;  %v4324_v31 = vpop.f32.mrb[5].mxu0  ;;  %v4457_v24 = vld [vmem:[#allocation11 + $0x8] ss:$16 sps:$4 sm:$0xff]   ;;  %v4465_v28 = vld [vmem:[#allocation11 + $0x4c] ss:$16 sps:$4 sm:$0xff]  }
 0x178   :  { %v262_v32 = vpop.f32.mrb[6].mxu0  ;;  %v4466_v31 = vld [vmem:[#allocation11 + $0x68] ss:$16 sps:$4 sm:$0xff]  }
 0x179   :  { %v272_v33 = vadd.f32 %v3840_v29, %v260_v30  ;;  %v4325_v34 = vpop.f32.mrb[7].mxu0  ;;  %v4463_v29 = vld [vmem:[#allocation11 + $0x48] ss:$16 sps:$4 sm:$0xff]   ;;  %v4468_v30 = vld [vmem:[#allocation11 + $0x6c] ss:$16 sps:$4 sm:$0xff]  }
 0x17a   :  { %v4471_v32 = vld [vmem:[#allocation11 + $0x8c] ss:$16 sps:$4 sm:$0xff]  }
 0x17b   :  { %v273_v35 = vmul.f32 0.2, %v272_v33  ;;  %v4474_v34 = vld [vmem:[#allocation11 + $0xac] ss:$16 sps:$4 sm:$0xff]  }
 0x17d   :  { %v274_v36 = vmax.f32 %v272_v33, %v273_v35  ;;  %v4469_v33 = vld [vmem:[#allocation11 + $0x88] ss:$16 sps:$4 sm:$0xff]  }
 0x17e   :  { %v4472_v35 = vld [vmem:[#allocation11 + $0xa8] ss:$16 sps:$4 sm:$0xff]  }
 0x17f   :  { %v275_v38 = vpack.c.bf16 %v274_v36, %v274_v36  ;;  %v4477_v36 = vld [vmem:[#allocation11 + $0xcc] ss:$16 sps:$4 sm:$0xff]  }
 0x181   :  { %417 = vmatmul.mubr.bf16.vlgmr.msra.gmra.mrb[0].mxu1 %v275_v38  ;;  %v4480_v38 = vld [vmem:[#allocation11 + $0xec] ss:$16 sps:$4 sm:$0xff]  }
 0x182   :  { %838 = vmatpush1.bf16.msra.mxu1 %v4409_v37  ;;  %v4475_v37 = vld [vmem:[#allocation11 + $0xc8] ss:$16 sps:$4 sm:$0xff]  }
 0x183   :  { %839 = vmatprep.subr.bf16.mxu1 %v4414_v39  ;;  %v4478_v39 = vld [vmem:[#allocation11 + $0xe8] ss:$16 sps:$4 sm:$0xff]  }
 0x186   :  { %840 = vmatpush1.bf16.msra.mxu1 %v4412_v40  ;;  %v4483_v40 = vld [vmem:[#allocation11 + $0x10c] ss:$16 sps:$4 sm:$0xff]  }
 0x187   :  { %841 = vmatprep.subr.bf16.mxu1 %v4417_v41  ;;  %v4481_v41 = vld [vmem:[#allocation11 + $0x108] ss:$16 sps:$4 sm:$0xff]  }
 0x18a   :  { %842 = vmatpush1.bf16.msra.mxu1 %v4415_v42  ;;  %v4486_v42 = vld [vmem:[#allocation11 + $0x12c] ss:$16 sps:$4 sm:$0xff]  }
 0x18b   :  { %843 = vmatprep.subr.bf16.mxu1 %v4420_v43  ;;  %v4484_v43 = vld [vmem:[#allocation11 + $0x128] ss:$16 sps:$4 sm:$0xff]  }
 0x18e   :  { %844 = vmatpush1.bf16.msra.mxu1 %v4418_v44  ;;  %v4489_v44 = vld [vmem:[#allocation11 + $0x14c] ss:$16 sps:$4 sm:$0xff]  }
 0x18f   :  { %845 = vmatprep.subr.bf16.mxu1 %v4423_v45  ;;  %v4487_v45 = vld [vmem:[#allocation11 + $0x148] ss:$16 sps:$4 sm:$0xff]  }
 0x192   :  { %846 = vmatpush1.bf16.msra.mxu1 %v4421_v46  ;;  %v4492_v46 = vld [vmem:[#allocation11 + $0x16c] ss:$16 sps:$4 sm:$0xff]  }
 0x193   :  { %847 = vmatprep.subr.bf16.mxu1 %v4426_v47  ;;  %v4490_v47 = vld [vmem:[#allocation11 + $0x168] ss:$16 sps:$4 sm:$0xff]  }
 0x196   :  { %848 = vmatpush1.bf16.msra.mxu1 %v4424_v48  ;;  %v4495_v48 = vld [vmem:[#allocation11 + $0x18c] ss:$16 sps:$4 sm:$0xff]  }
 0x197   :  { %849 = vmatprep.subr.bf16.mxu1 %v4429_v49  ;;  %v4493_v49 = vld [vmem:[#allocation11 + $0x188] ss:$16 sps:$4 sm:$0xff]  }
 0x19a   :  { %850 = vmatpush1.bf16.msra.mxu1 %v4427_v50  ;;  %v4498_v50 = vld [vmem:[#allocation11 + $0x1ac] ss:$16 sps:$4 sm:$0xff]  }
 0x19b   :  { %851 = vmatprep.subr.bf16.mxu1 %v4432_v51  ;;  %v4496_v51 = vld [vmem:[#allocation11 + $0x1a8] ss:$16 sps:$4 sm:$0xff]  }
 0x19e   :  { %852 = vmatpush1.bf16.msra.mxu1 %v4430_v52  ;;  %v4501_v52 = vld [vmem:[#allocation11 + $0x1cc] ss:$16 sps:$4 sm:$0xff]  }
 0x19f   :  { %853 = vmatprep.subr.bf16.mxu1 %v4435_v53  ;;  %v4499_v53 = vld [vmem:[#allocation11 + $0x1c8] ss:$16 sps:$4 sm:$0xff]  }
 0x1a2   :  { %854 = vmatpush1.bf16.msra.mxu1 %v4433_v54  ;;  %v4504_v54 = vld [vmem:[#allocation11 + $0x1ec] ss:$16 sps:$4 sm:$0xff]  }
 0x1a3   :  { %855 = vmatprep.subr.bf16.mxu1 %v4438_v55  ;;  %v931_v55 = vld [vmem:[#allocation13] sm:$0xff] }
 0x1a6   :  { %856 = vmatpush1.bf16.msra.mxu1 %v4436_v56  ;;  %v935_v56 = vld [vmem:[#allocation13 + $0x20] sm:$0xff] }
 0x1a7   :  { %857 = vmatprep.subr.bf16.mxu1 %v4441_v57  ;;  %v4502_v57 = vld [vmem:[#allocation11 + $0x1e8] ss:$16 sps:$4 sm:$0xff]  }
 0x1aa   :  { %858 = vmatpush1.bf16.msra.mxu1 %v4439_v58  ;;  %v3922_v58 = vcombine.high %v931_v55, %v935_v56 }
 0x1ab   :  { %859 = vmatprep.subr.bf16.mxu1 %v4444_v59  ;;  %v939_v59 = vld [vmem:[#allocation13 + $0x40] sm:$0xff] }
 0x1ae   :  { %860 = vmatpush1.bf16.msra.mxu1 %v4442_v60  ;;  %v943_v60 = vld [vmem:[#allocation13 + $0x60] sm:$0xff] }
 0x1af   :  { %861 = vmatprep.subr.bf16.mxu1 %v4447_v61  ;;  %v3921_v61 = vcombine.low %v931_v55, %v935_v56 }
 0x1b2   :  { %862 = vmatpush1.bf16.msra.mxu1 %v4445_v62  ;;  %v3930_v62 = vcombine.high %v939_v59, %v943_v60 }
 0x1b3   :  { %863 = vmatprep.subr.bf16.mxu1 %v4450_v63  ;;  %v947_v63 = vld [vmem:[#allocation13 + $0x80] sm:$0xff] }
 0x1b6   :  { %864 = vmatpush1.bf16.msra.mxu1 %v4448_v0  ;;  %v951_v0 = vld [vmem:[#allocation13 + $0xa0] sm:$0xff] }
 0x1b7   :  { %865 = vmatprep.subr.bf16.mxu1 %v4453_v1  ;;  %v3929_v1 = vcombine.low %v939_v59, %v943_v60  ;;  %v1027_v59 = vld [vmem:[#allocation13 + $0x300] sm:$0xff] }
 0x1b8   :  { %v1031_v60 = vld [vmem:[#allocation13 + $0x320] sm:$0xff] }
 0x1ba   :  { %866 = vmatpush1.bf16.msra.mxu1 %v4451_v2  ;;  %v3938_v2 = vcombine.high %v947_v63, %v951_v0 }
 0x1bb   :  { %867 = vmatprep.subr.bf16.mxu1 %v4456_v3  ;;  %v955_v3 = vld [vmem:[#allocation13 + $0xc0] sm:$0xff] }
 0x1be   :  { %868 = vmatpush1.bf16.msra.mxu1 %v4454_v4  ;;  %v959_v4 = vld [vmem:[#allocation13 + $0xe0] sm:$0xff] }
 0x1bf   :  { %878 = vmatprep.subr.bf16.mxu1 %v4459_v5  ;;  %v3937_v5 = vcombine.low %v947_v63, %v951_v0  ;;  %v3946_v6 = vcombine.high %v955_v3, %v959_v4  ;;  %v4018_v0 = vcombine.high %v1027_v59, %v1031_v60 }
 0x254   :  { %v418_v13 = vpop.f32.mrb[0].mxu1 }
 0x255   :  { %v419_v14 = vadd.f32 %v418_v13, %v297_v11  ;;  %v420_v15 = vpop.f32.mrb[1].mxu1  ;;  %v967_v11 = vld [vmem:[#allocation13 + $0x120] sm:$0xff] }
 0x256   :  { %v421_v16 = vadd.f32 %v420_v15, %v301_v12  ;;  %v422_v17 = vpop.f32.mrb[2].mxu1  ;;  %v3945_v12 = vcombine.low %v955_v3, %v959_v4  ;;  %v3954_v13 = vcombine.high %v963_v9, %v967_v11  ;;  %v975_v15 = vld [vmem:[#allocation13 + $0x160] sm:$0xff] }
 0x257   :  { %v425_v18 = vmul.f32 0.2, %v419_v14  ;;  %v423_v19 = vpop.f32.mrb[3].mxu1  ;;  %v1035_v3 = vld [vmem:[#allocation13 + $0x340] sm:$0xff] }
 0x258   :  { %v426_v20 = vmul.f32 0.2, %v421_v16  ;;  %v983_v19 = vld [vmem:[#allocation13 + $0x1a0] sm:$0xff] }
 0x259   :  { %v427_v21 = vmax.f32 %v419_v14, %v425_v18  ;;  %v971_v14 = vld [vmem:[#allocation13 + $0x140] sm:$0xff] }
 0x25a   :  { %v428_v22 = vmax.f32 %v421_v16, %v426_v20  ;;  %v3953_v16 = vcombine.low %v963_v9, %v967_v11  ;;  %v3962_v17 = vcombine.high %v971_v14, %v975_v15  ;;  %v979_v18 = vld [vmem:[#allocation13 + $0x180] sm:$0xff]  ;;  %v3961_v20 = vcombine.low %v971_v14, %v975_v15 }
 0x25b   :  { %v5127_v25 = vpack.c.bf16 %v427_v21, %v427_v21  ;;  %v3970_v21 = vcombine.high %v979_v18, %v983_v19  ;;  %v1039_v4 = vld [vmem:[#allocation13 + $0x360] sm:$0xff]  ;;  %v4017_v9 = vcombine.low %v1027_v59, %v1031_v60 }
 0x25c   :  { %v430_v23 = vpack.c.bf16 %v428_v22, %v428_v22  ;;  %v987_v22 = vld [vmem:[#allocation13 + $0x1c0] sm:$0xff]  ;;  %v4026_v11 = vcombine.high %v1035_v3, %v1039_v4 }
 0x25d   :  { %v1043_v14 = vld [vmem:[#allocation13 + $0x380] sm:$0xff] }
 0x25e   :  { %869 = vmatprep.mubr.bf16.mxu1 %v430_v23  ;;  %v1047_v15 = vld [vmem:[#allocation13 + $0x3a0] sm:$0xff] }
 0x25f   :  { %870 = vmatmul.mubr.bf16.vlgmr.msra.gmra.mrb[4].mxu1 %v5127_v25 }
 0x260   :  { %879 = vmatpush1.bf16.msra.mxu1 %v4457_v24  ;;  %910 = vmatprep.mubr.bf16.mxu1 %v430_v23  ;;  %v991_v23 = vld [vmem:[#allocation13 + $0x1e0] sm:$0xff]  ;;  %v3969_v24 = vcombine.low %v979_v18, %v983_v19  ;;  %v4025_v18 = vcombine.low %v1035_v3, %v1039_v4  ;;  %v4034_v19 = vcombine.high %v1043_v14, %v1047_v15 }
 0x261   :  { %880 = vmatprep.subr.bf16.mxu1 %v4462_v26  ;;  %v995_v26 = vld [vmem:[#allocation13 + $0x200] sm:$0xff] }
 0x264   :  { %881 = vmatpush1.bf16.msra.mxu1 %v4460_v27  ;;  %v999_v27 = vld [vmem:[#allocation13 + $0x220] sm:$0xff] }
 0x265   :  { %882 = vmatprep.subr.bf16.mxu1 %v4465_v28  ;;  %v3977_v28 = vcombine.low %v987_v22, %v991_v23 }
 0x268   :  { %883 = vmatpush1.bf16.msra.mxu1 %v4463_v29  ;;  %v3986_v29 = vcombine.high %v995_v26, %v999_v27 }
 0x269   :  { %884 = vmatprep.subr.bf16.mxu1 %v4468_v30  ;;  %v1003_v30 = vld [vmem:[#allocation13 + $0x240] sm:$0xff] }
 0x26c   :  { %885 = vmatpush1.bf16.msra.mxu1 %v4466_v31  ;;  %v1059_v31 = vld [vmem:[#allocation13 + $0x400] sm:$0xff] }
 0x26d   :  { %886 = vmatprep.subr.bf16.mxu1 %v4471_v32  ;;  %v1063_v32 = vld [vmem:[#allocation13 + $0x420] sm:$0xff] }
 0x270   :  { %887 = vmatpush1.bf16.msra.mxu1 %v4469_v33  ;;  %v1007_v33 = vld [vmem:[#allocation13 + $0x260] sm:$0xff] }
 0x271   :  { %888 = vmatprep.subr.bf16.mxu1 %v4474_v34  ;;  %v4049_v34 = vcombine.low %v1059_v31, %v1063_v32 }
 0x274   :  { %889 = vmatpush1.bf16.msra.mxu1 %v4472_v35  ;;  %v4050_v35 = vcombine.high %v1059_v31, %v1063_v32 }
 0x275   :  { %890 = vmatprep.subr.bf16.mxu1 %v4477_v36  ;;  %v5131_v36 = vld [vmem:[#allocation13 + $0x8] sm:$0xff] }
 0x276   :  { %2550 = vmatprep.subr.bf16.mxu0 %v4050_v35  ;;  %v1127_v35 = vld [vmem:[#allocation13 + $0x620] sm:$0xff] }
 0x277   :  { %2551 = vmatpush1.bf16.msra.mxu0 %v4049_v34  ;;  %v1123_v34 = vld [vmem:[#allocation13 + $0x600] sm:$0xff] }
 0x278   :  { %891 = vmatpush1.bf16.msra.mxu1 %v4475_v37  ;;  %v5133_v37 = vld [vmem:[#allocation13 + $0x28] sm:$0xff] }
 0x279   :  { %892 = vmatprep.subr.bf16.mxu1 %v4480_v38  ;;  %v3985_v38 = vcombine.low %v995_v26, %v999_v27  ;;  %v4033_v26 = vcombine.low %v1043_v14, %v1047_v15 }
 0x27c   :  { %893 = vmatpush1.bf16.msra.mxu1 %v4478_v39  ;;  %v3923_v39 = vcombine.low %v5131_v36, %v5133_v37 }
 0x27d   :  { %894 = vmatprep.subr.bf16.mxu1 %v4483_v40  ;;  %v3994_v40 = vcombine.high %v1003_v30, %v1007_v33 }
 0x280   :  { %895 = vmatpush1.bf16.msra.mxu1 %v4481_v41  ;;  %v1067_v41 = vld [vmem:[#allocation13 + $0x440] sm:$0xff] }
 0x281   :  { %896 = vmatprep.subr.bf16.mxu1 %v4486_v42  ;;  %v1071_v42 = vld [vmem:[#allocation13 + $0x460] sm:$0xff] }
 0x284   :  { %897 = vmatpush1.bf16.msra.mxu1 %v4484_v43  ;;  %v1011_v43 = vld [vmem:[#allocation13 + $0x280] sm:$0xff] }
 0x285   :  { %898 = vmatprep.subr.bf16.mxu1 %v4489_v44  ;;  %v1015_v44 = vld [vmem:[#allocation13 + $0x2a0] sm:$0xff] }
 0x286   :  { %v4001_v55 = vcombine.low %v1011_v43, %v1015_v44 }
 0x288   :  { %899 = vmatpush1.bf16.msra.mxu1 %v4487_v45  ;;  %v4057_v45 = vcombine.low %v1067_v41, %v1071_v42 }
 0x289   :  { %900 = vmatprep.subr.bf16.mxu1 %v4492_v46  ;;  %v4058_v46 = vcombine.high %v1067_v41, %v1071_v42  ;;  %v1131_v41 = vld [vmem:[#allocation13 + $0x640] sm:$0xff] }
 0x28a   :  { %v1135_v42 = vld [vmem:[#allocation13 + $0x660] sm:$0xff] }
 0x28b   :  { %2552 = vmatprep.subr.bf16.mxu0 %v4058_v46  ;;  %v1143_v46 = vld [vmem:[#allocation13 + $0x6a0] sm:$0xff] }
 0x28c   :  { %901 = vmatpush1.bf16.msra.mxu1 %v4490_v47  ;;  %v3993_v47 = vcombine.low %v1003_v30, %v1007_v33  ;;  %2553 = vmatpush1.bf16.msra.mxu0 %v4057_v45  ;;  %v3924_v33 = vcombine.high %v5131_v36, %v5133_v37  ;;  %v1139_v45 = vld [vmem:[#allocation13 + $0x680] sm:$0xff]  ;;  %v976_v36 = vld [vmem:[#allocation13 + $0x168] sm:$0xff] }
 0x28d   :  { %902 = vmatprep.subr.bf16.mxu1 %v4495_v48  ;;  %v4002_v48 = vcombine.high %v1011_v43, %v1015_v44  ;;  %v4121_v43 = vcombine.low %v1131_v41, %v1135_v42  ;;  %v4122_v44 = vcombine.high %v1131_v41, %v1135_v42  ;;  %v964_v41 = vld [vmem:[#allocation13 + $0x108] sm:$0xff] }
 0x28e   :  { %v968_v42 = vld [vmem:[#allocation13 + $0x128] sm:$0xff] }
 0x28f   :  { %v3955_v37 = vcombine.low %v964_v41, %v968_v42 }
 0x290   :  { %903 = vmatpush1.bf16.msra.mxu1 %v4493_v49  ;;  %v1075_v49 = vld [vmem:[#allocation13 + $0x480] sm:$0xff] }
 0x291   :  { %904 = vmatprep.subr.bf16.mxu1 %v4498_v50  ;;  %v1079_v50 = vld [vmem:[#allocation13 + $0x4a0] sm:$0xff] }
 0x294   :  { %905 = vmatpush1.bf16.msra.mxu1 %v4496_v51  ;;  %v1019_v51 = vld [vmem:[#allocation13 + $0x2c0] sm:$0xff] }
 0x295   :  { %906 = vmatprep.subr.bf16.mxu1 %v4501_v52  ;;  %v1023_v52 = vld [vmem:[#allocation13 + $0x2e0] sm:$0xff] }
 0x296   :  { %v4010_v56 = vcombine.high %v1019_v51, %v1023_v52  ;;  %v4009_v63 = vcombine.low %v1019_v51, %v1023_v52 }
 0x298   :  { %907 = vmatpush1.bf16.msra.mxu1 %v4499_v53  ;;  %v4065_v53 = vcombine.low %v1075_v49, %v1079_v50 }
 0x299   :  { %908 = vmatprep.subr.bf16.mxu1 %v4504_v54  ;;  %v4066_v54 = vcombine.high %v1075_v49, %v1079_v50  ;;  %v1147_v49 = vld [vmem:[#allocation13 + $0x6c0] sm:$0xff] }
 0x29a   :  { %v1151_v50 = vld [vmem:[#allocation13 + $0x6e0] sm:$0xff] }
 0x29b   :  { %2554 = vmatprep.subr.bf16.mxu0 %v4066_v54  ;;  %v4137_v51 = vcombine.low %v1147_v49, %v1151_v50  ;;  %v4138_v52 = vcombine.high %v1147_v49, %v1151_v50  ;;  %v1159_v54 = vld [vmem:[#allocation13 + $0x720] sm:$0xff]  ;;  %v988_v50 = vld [vmem:[#allocation13 + $0x1c8] sm:$0xff] }
 0x29c   :  { %909 = vmatpush1.bf16.msra.mxu1 %v4502_v57  ;;  %2555 = vmatpush1.bf16.msra.mxu0 %v4065_v53  ;;  %v1083_v57 = vld [vmem:[#allocation13 + $0x4c0] sm:$0xff] }
 0x29d   :  { %2509 = vmatprep.subr.bf16.mxu1 %v3922_v58  ;;  %v1087_v58 = vld [vmem:[#allocation13 + $0x4e0] sm:$0xff] }
 0x29e   :  { %v1155_v53 = vld [vmem:[#allocation13 + $0x700] sm:$0xff] }
 0x29f   :  { %911 = vmatmul.mubr.bf16.vlgmr.msra.gmra.mrb[8].mxu1 %v5127_v25  ;;  %v3978_v25 = vcombine.high %v987_v22, %v991_v23  ;;  %v1051_v22 = vld [vmem:[#allocation13 + $0x3c0] sm:$0xff] }
 0x2a0   :  { %2510 = vmatpush1.bf16.msra.mxu1 %v3921_v61  ;;  %v4073_v61 = vcombine.low %v1083_v57, %v1087_v58  ;;  %v1055_v23 = vld [vmem:[#allocation13 + $0x3e0] sm:$0xff] }
 0x2a1   :  { %2511 = vmatprep.subr.bf16.mxu1 %v3930_v62  ;;  %v4074_v62 = vcombine.high %v1083_v57, %v1087_v58  ;;  %v4042_v27 = vcombine.high %v1051_v22, %v1055_v23  ;;  %v4041_v32 = vcombine.low %v1051_v22, %v1055_v23  ;;  %v1163_v57 = vld [vmem:[#allocation13 + $0x740] sm:$0xff] }
 0x2a2   :  { %v1167_v58 = vld [vmem:[#allocation13 + $0x760] sm:$0xff] }
 0x2a3   :  { %2556 = vmatprep.subr.bf16.mxu0 %v4074_v62  ;;  %v4153_v59 = vcombine.low %v1163_v57, %v1167_v58  ;;  %v4154_v60 = vcombine.high %v1163_v57, %v1167_v58  ;;  %v1175_v62 = vld [vmem:[#allocation13 + $0x7a0] sm:$0xff]  ;;  %v1004_v58 = vld [vmem:[#allocation13 + $0x248] sm:$0xff] }
 0x2a4   :  { %2512 = vmatpush1.bf16.msra.mxu1 %v3929_v1  ;;  %2557 = vmatpush1.bf16.msra.mxu0 %v4073_v61  ;;  %v1091_v1 = vld [vmem:[#allocation13 + $0x500] sm:$0xff] }
 0x2a5   :  { %2513 = vmatprep.subr.bf16.mxu1 %v3938_v2  ;;  %v1095_v2 = vld [vmem:[#allocation13 + $0x520] sm:$0xff] }
 0x2a6   :  { %v1171_v61 = vld [vmem:[#allocation13 + $0x780] sm:$0xff] }
 0x2a8   :  { %2514 = vmatpush1.bf16.msra.mxu1 %v3937_v5  ;;  %v4081_v5 = vcombine.low %v1091_v1, %v1095_v2 }
 0x2a9   :  { %2515 = vmatprep.subr.bf16.mxu1 %v3946_v6  ;;  %v4082_v6 = vcombine.high %v1091_v1, %v1095_v2  ;;  %v1179_v1 = vld [vmem:[#allocation13 + $0x7c0] sm:$0xff] }
 0x2aa   :  { %v1183_v2 = vld [vmem:[#allocation13 + $0x7e0] sm:$0xff] }
 0x2ab   :  { %2558 = vmatprep.subr.bf16.mxu0 %v4082_v6  ;;  %v4170_v3 = vcombine.high %v1179_v1, %v1183_v2  ;;  %v4169_v4 = vcombine.low %v1179_v1, %v1183_v2  ;;  %v5141_v6 = vld [vmem:[#allocation13 + $0x30] sm:$0xff]  ;;  %v1020_v2 = vld [vmem:[#allocation13 + $0x2c8] sm:$0xff] }
 0x2ac   :  { %2516 = vmatpush1.bf16.msra.mxu1 %v3945_v12  ;;  %2559 = vmatpush1.bf16.msra.mxu0 %v4081_v5  ;;  %v1099_v12 = vld [vmem:[#allocation13 + $0x540] sm:$0xff]  ;;  %v5139_v5 = vld [vmem:[#allocation13 + $0x10] sm:$0xff] }
 0x2ad   :  { %2517 = vmatprep.subr.bf16.mxu1 %v3954_v13  ;;  %v1103_v13 = vld [vmem:[#allocation13 + $0x560] sm:$0xff] }
 0x2b0   :  { %2518 = vmatpush1.bf16.msra.mxu1 %v3953_v16  ;;  %v4089_v16 = vcombine.low %v1099_v12, %v1103_v13 }
 0x2b1   :  { %2519 = vmatprep.subr.bf16.mxu1 %v3962_v17  ;;  %v4090_v17 = vcombine.high %v1099_v12, %v1103_v13  ;;  %v5150_v12 = vld [vmem:[%s5248_s8] sm:$0xf] }
 0x2b2   :  { %v500_v13 = vrot.slane %v5150_v12, %v5117_v8  ;;  %v504_v14 = vrot.slane %v5150_v12, %v5123_v10 }
 0x2b3   :  { %2560 = vmatprep.subr.bf16.mxu0 %v4090_v17 }
 0x2b4   :  { %2520 = vmatpush1.bf16.msra.mxu1 %v3961_v20  ;;  %2561 = vmatpush1.bf16.msra.mxu0 %v4089_v16  ;;  %v1107_v20 = vld [vmem:[#allocation13 + $0x580] sm:$0xff] }
 0x2b5   :  { %2521 = vmatprep.subr.bf16.mxu1 %v3970_v21  ;;  %v1111_v21 = vld [vmem:[#allocation13 + $0x5a0] sm:$0xff] }
 0x2b8   :  { %2522 = vmatpush1.bf16.msra.mxu1 %v3969_v24  ;;  %v4097_v24 = vcombine.low %v1107_v20, %v1111_v21 }
 0x2b9   :  { %2523 = vmatprep.subr.bf16.mxu1 %v3978_v25  ;;  %v4098_v25 = vcombine.high %v1107_v20, %v1111_v21 }
 0x2bb   :  { %2562 = vmatprep.subr.bf16.mxu0 %v4098_v25  ;;  %v940_v25 = vld [vmem:[#allocation13 + $0x48] sm:$0xff] }
 0x2bc   :  { %2524 = vmatpush1.bf16.msra.mxu1 %v3977_v28  ;;  %2563 = vmatpush1.bf16.msra.mxu0 %v4097_v24  ;;  %v1115_v28 = vld [vmem:[#allocation13 + $0x5c0] sm:$0xff] }
 0x2bd   :  { %2525 = vmatprep.subr.bf16.mxu1 %v3986_v29  ;;  %v1119_v29 = vld [vmem:[#allocation13 + $0x5e0] sm:$0xff] }
 0x2be   :  { %v4105_v30 = vcombine.low %v1115_v28, %v1119_v29  ;;  %v4106_v31 = vcombine.high %v1115_v28, %v1119_v29 }
 0x2c0   :  { %2526 = vmatpush1.bf16.msra.mxu1 %v3985_v38  ;;  %2564 = vmatprep.subr.bf16.mxu0 %v4106_v31  ;;  %v4113_v38 = vcombine.low %v1123_v34, %v1127_v35  ;;  %v952_v31 = vld [vmem:[#allocation13 + $0xa8] sm:$0xff] }
 0x2c1   :  { %2527 = vmatprep.subr.bf16.mxu1 %v3994_v40  ;;  %2565 = vmatpush1.bf16.msra.mxu0 %v4105_v30  ;;  %v4114_v40 = vcombine.high %v1123_v34, %v1127_v35  ;;  %v948_v30 = vld [vmem:[#allocation13 + $0x88] sm:$0xff] }
 0x2c2   :  { %v956_v34 = vld [vmem:[#allocation13 + $0xc8] sm:$0xff] }
 0x2c3   :  { %2566 = vmatprep.subr.bf16.mxu0 %v4114_v40  ;;  %v960_v35 = vld [vmem:[#allocation13 + $0xe8] sm:$0xff] }
 0x2c4   :  { %2528 = vmatpush1.bf16.msra.mxu1 %v3993_v47  ;;  %v4129_v47 = vcombine.low %v1139_v45, %v1143_v46  ;;  %v3948_v40 = vcombine.high %v956_v34, %v960_v35 }
 0x2c5   :  { %2529 = vmatprep.subr.bf16.mxu1 %v4002_v48  ;;  %2567 = vmatpush1.bf16.msra.mxu0 %v4113_v38  ;;  %v4130_v48 = vcombine.high %v1139_v45, %v1143_v46  ;;  %v3939_v38 = vcombine.low %v948_v30, %v952_v31  ;;  %v972_v45 = vld [vmem:[#allocation13 + $0x148] sm:$0xff] }
 0x2c6   :  { %2568 = vmatprep.subr.bf16.mxu0 %v4122_v44  ;;  %v3956_v44 = vcombine.high %v964_v41, %v968_v42  ;;  %v980_v46 = vld [vmem:[#allocation13 + $0x188] sm:$0xff] }
 0x2c8   :  { %2530 = vmatpush1.bf16.msra.mxu1 %v4001_v55  ;;  %v4145_v55 = vcombine.low %v1155_v53, %v1159_v54 }
 0x2c9   :  { %2531 = vmatprep.subr.bf16.mxu1 %v4010_v56  ;;  %2569 = vmatpush1.bf16.msra.mxu0 %v4121_v43  ;;  %v4146_v56 = vcombine.high %v1155_v53, %v1159_v54  ;;  %v3947_v43 = vcombine.low %v956_v34, %v960_v35  ;;  %v996_v54 = vld [vmem:[#allocation13 + $0x208] sm:$0xff] }
 0x2ca   :  { %2570 = vmatprep.subr.bf16.mxu0 %v4130_v48  ;;  %v3963_v48 = vcombine.low %v972_v45, %v976_v36 }
 0x2cc   :  { %2532 = vmatpush1.bf16.msra.mxu1 %v4009_v63  ;;  %v4162_v63 = vcombine.high %v1171_v61, %v1175_v62 }
 0x2cd   :  { %2533 = vmatprep.subr.bf16.mxu1 %v4018_v0  ;;  %2571 = vmatpush1.bf16.msra.mxu0 %v4129_v47  ;;  %v4161_v0 = vcombine.low %v1171_v61, %v1175_v62  ;;  %v984_v47 = vld [vmem:[#allocation13 + $0x1a8] sm:$0xff] }
 0x2ce   :  { %2572 = vmatprep.subr.bf16.mxu0 %v4138_v52  ;;  %v3972_v49 = vcombine.high %v980_v46, %v984_v47  ;;  %v3971_v52 = vcombine.low %v980_v46, %v984_v47  ;;  %v1012_v62 = vld [vmem:[#allocation13 + $0x288] sm:$0xff] }
 0x2d0   :  { %2534 = vmatpush1.bf16.msra.mxu1 %v4017_v9  ;;  %v3926_v9 = vcombine.high %v5139_v5, %v5141_v6 }
 0x2d1   :  { %2535 = vmatprep.subr.bf16.mxu1 %v4026_v11  ;;  %2573 = vmatpush1.bf16.msra.mxu0 %v4137_v51  ;;  %v3925_v11 = vcombine.low %v5139_v5, %v5141_v6  ;;  %v992_v51 = vld [vmem:[#allocation13 + $0x1e8] sm:$0xff] }
 0x2d2   :  { %2574 = vmatprep.subr.bf16.mxu0 %v4146_v56  ;;  %v3980_v53 = vcombine.high %v988_v50, %v992_v51  ;;  %v3979_v56 = vcombine.low %v988_v50, %v992_v51  ;;  %v1068_v50 = vld [vmem:[#allocation13 + $0x448] sm:$0xff] }
 0x2d3   :  { %v1072_v51 = vld [vmem:[#allocation13 + $0x468] sm:$0xff] }
 0x2d4   :  { %2536 = vmatpush1.bf16.msra.mxu1 %v4025_v18 }
 0x2d5   :  { %2537 = vmatprep.subr.bf16.mxu1 %v4034_v19  ;;  %2575 = vmatpush1.bf16.msra.mxu0 %v4145_v55  ;;  %v1000_v55 = vld [vmem:[#allocation13 + $0x228] sm:$0xff] }
 0x2d6   :  { %2576 = vmatprep.subr.bf16.mxu0 %v4154_v60  ;;  %v3988_v57 = vcombine.high %v996_v54, %v1000_v55  ;;  %v3987_v60 = vcombine.low %v996_v54, %v1000_v55  ;;  %v949_v55 = vld [vmem:[#allocation13 + $0x90] sm:$0xff] }
 0x2d8   :  { %2538 = vmatpush1.bf16.msra.mxu1 %v4033_v26  ;;  %v944_v26 = vld [vmem:[#allocation13 + $0x68] sm:$0xff] }
 0x2d9   :  { %2539 = vmatprep.subr.bf16.mxu1 %v4042_v27  ;;  %2577 = vmatpush1.bf16.msra.mxu0 %v4153_v59  ;;  %v3932_v29 = vcombine.high %v940_v25, %v944_v26  ;;  %v1008_v59 = vld [vmem:[#allocation13 + $0x268] sm:$0xff] }
 0x2da   :  { %2578 = vmatprep.subr.bf16.mxu0 %v4162_v63  ;;  %v3996_v61 = vcombine.high %v1004_v58, %v1008_v59  ;;  %v1016_v63 = vld [vmem:[#allocation13 + $0x2a8] sm:$0xff] }
 0x2db   :  { %v4004_v1 = vcombine.high %v1012_v62, %v1016_v63 }
 0x2dc   :  { %2540 = vmatpush1.bf16.msra.mxu1 %v4041_v32  ;;  %v3931_v32 = vcombine.low %v940_v25, %v944_v26 }
 0x2dd   :  { %2591 = vmatprep.subr.bf16.mxu1 %v3924_v33  ;;  %2579 = vmatpush1.bf16.msra.mxu0 %v4161_v0  ;;  %v3940_v33 = vcombine.high %v948_v30, %v952_v31  ;;  %v3995_v0 = vcombine.low %v1004_v58, %v1008_v59  ;;  %v1052_v31 = vld [vmem:[#allocation13 + $0x3c8] sm:$0xff]  ;;  %v953_v58 = vld [vmem:[#allocation13 + $0xb0] sm:$0xff] }
 0x2de   :  { %2580 = vmatprep.subr.bf16.mxu0 %v4170_v3  ;;  %v1024_v3 = vld [vmem:[#allocation13 + $0x2e8] sm:$0xff] }
 0x2df   :  { %v1076_v59 = vld [vmem:[#allocation13 + $0x488] sm:$0xff] }
 0x2e1   :  { %2581 = vmatpush1.bf16.msra.mxu0 %v4169_v4  ;;  %v4003_v4 = vcombine.low %v1012_v62, %v1016_v63  ;;  %v4059_v62 = vcombine.low %v1068_v50, %v1072_v51  ;;  %v3942_v63 = vcombine.high %v949_v55, %v953_v58 }
 0x2e2   :  { %2673 = vmatprep.subr.bf16.mxu0 %v3926_v9  ;;  %v4012_v9 = vcombine.high %v1020_v2, %v1024_v3 }
 0x332   :  { %v871_v15 = vpop.f32.mrb[4].mxu1 }
 0x333   :  { %v872_v16 = vadd.f32 %v871_v15, %v500_v13  ;;  %v873_v17 = vpop.f32.mrb[5].mxu1  ;;  %v1028_v13 = vld [vmem:[#allocation13 + $0x308] sm:$0xff]  ;;  %v4011_v15 = vcombine.low %v1020_v2, %v1024_v3  ;;  %v961_v2 = vld [vmem:[#allocation13 + $0xf0] sm:$0xff] }
 0x334   :  { %v874_v18 = vadd.f32 %v873_v17, %v504_v14  ;;  %v875_v19 = vpop.f32.mrb[6].mxu1  ;;  %v1032_v14 = vld [vmem:[#allocation13 + $0x328] sm:$0xff] }
 0x335   :  { %v919_v20 = vmul.f32 0.2, %v872_v16  ;;  %v876_v21 = vpop.f32.mrb[7].mxu1  ;;  %v1036_v17 = vld [vmem:[#allocation13 + $0x348] sm:$0xff]  ;;  %v4019_v19 = vcombine.low %v1028_v13, %v1032_v14 }
 0x336   :  { %v920_v22 = vmul.f32 0.2, %v874_v18  ;;  %v507_v21 = vsub.s32 2, %v5114_v7  ;;  %v1084_v3 = vld [vmem:[#allocation13 + $0x4c8] sm:$0xff] }
 0x337   :  { %v923_v23 = vmax.f32 %v872_v16, %v919_v20  ;;  %v4020_v16 = vcombine.high %v1028_v13, %v1032_v14  ;;  %v965_v13 = vld [vmem:[#allocation13 + $0x110] sm:$0xff] }
 0x338   :  { %v924_v24 = vmax.f32 %v874_v18, %v920_v22  ;;  %v1040_v18 = vld [vmem:[#allocation13 + $0x368] sm:$0xff]  ;;  %v511_v22 = vsub.s32 3, %v5114_v7  ;;  %v508_v26 = vrot.slane %v5150_v12, %v507_v21  ;;  %v969_v14 = vld [vmem:[#allocation13 + $0x130] sm:$0xff] }
 0x339   :  { %v5158_v28 = vpack.c.bf16 %v923_v23, %v923_v23  ;;  %v4028_v20 = vcombine.high %v1036_v17, %v1040_v18  ;;  %v1044_v23 = vld [vmem:[#allocation13 + $0x388] sm:$0xff]  ;;  %v4027_v25 = vcombine.low %v1036_v17, %v1040_v18 }
 0x33a   :  { %v5156_v27 = vpack.c.bf16 %v924_v24, %v924_v24  ;;  %v1048_v24 = vld [vmem:[#allocation13 + $0x3a8] sm:$0xff]  ;;  %v512_v30 = vrot.slane %v5150_v12, %v511_v22 }
 0x33b   :  { %v4035_v34 = vcombine.low %v1044_v23, %v1048_v24 }
 0x33c   :  { %2541 = vmatprep.mubr.bf16.mxu1 %v5156_v27 }
 0x33d   :  { %2542 = vmatmul.mubr.bf16.vlgmr.msra.gmra.mrb[12].mxu1 %v5158_v28 }
 0x33e   :  { %2592 = vmatpush1.bf16.msra.mxu1 %v3923_v39  ;;  %2623 = vmatprep.mubr.bf16.mxu1 %v5156_v27  ;;  %v3964_v39 = vcombine.high %v972_v45, %v976_v36 }
 0x33f   :  { %2593 = vmatprep.subr.bf16.mxu1 %v3932_v29  ;;  %v4036_v29 = vcombine.high %v1044_v23, %v1048_v24  ;;  %v973_v23 = vld [vmem:[#allocation13 + $0x150] sm:$0xff] }
 0x340   :  { %v977_v24 = vld [vmem:[#allocation13 + $0x170] sm:$0xff] }
 0x342   :  { %2594 = vmatpush1.bf16.msra.mxu1 %v3931_v32  ;;  %v1056_v32 = vld [vmem:[#allocation13 + $0x3e8] sm:$0xff] }
 0x343   :  { %2595 = vmatprep.subr.bf16.mxu1 %v3940_v33 }
 0x346   :  { %2596 = vmatpush1.bf16.msra.mxu1 %v3939_v38 }
 0x347   :  { %2597 = vmatprep.subr.bf16.mxu1 %v3948_v40  ;;  %v4044_v40 = vcombine.high %v1052_v31, %v1056_v32 }
 0x34a   :  { %2598 = vmatpush1.bf16.msra.mxu1 %v3947_v43  ;;  %v1060_v43 = vld [vmem:[#allocation13 + $0x408] sm:$0xff] }
 0x34b   :  { %2599 = vmatprep.subr.bf16.mxu1 %v3956_v44  ;;  %v1064_v44 = vld [vmem:[#allocation13 + $0x428] sm:$0xff] }
 0x34c   :  { %v4052_v12 = vcombine.high %v1060_v43, %v1064_v44 }
 0x34e   :  { %2600 = vmatpush1.bf16.msra.mxu1 %v3955_v37 }
 0x34f   :  { %2601 = vmatprep.subr.bf16.mxu1 %v3964_v39  ;;  %v4043_v39 = vcombine.low %v1052_v31, %v1056_v32  ;;  %v3966_v31 = vcombine.high %v973_v23, %v977_v24 }
 0x352   :  { %2602 = vmatpush1.bf16.msra.mxu1 %v3963_v48  ;;  %v941_v48 = vld [vmem:[#allocation13 + $0x50] sm:$0xff] }
 0x353   :  { %2603 = vmatprep.subr.bf16.mxu1 %v3972_v49  ;;  %v945_v49 = vld [vmem:[#allocation13 + $0x70] sm:$0xff] }
 0x356   :  { %2604 = vmatpush1.bf16.msra.mxu1 %v3971_v52 }
 0x357   :  { %2605 = vmatprep.subr.bf16.mxu1 %v3980_v53  ;;  %v4051_v53 = vcombine.low %v1060_v43, %v1064_v44  ;;  %v989_v44 = vld [vmem:[#allocation13 + $0x1d0] sm:$0xff] }
 0x35a   :  { %2606 = vmatpush1.bf16.msra.mxu1 %v3979_v56  ;;  %v3934_v56 = vcombine.high %v941_v48, %v945_v49 }
 0x35b   :  { %2607 = vmatprep.subr.bf16.mxu1 %v3988_v57  ;;  %v4060_v57 = vcombine.high %v1068_v50, %v1072_v51  ;;  %v1124_v50 = vld [vmem:[#allocation13 + $0x608] sm:$0xff] }
 0x35c   :  { %v1128_v51 = vld [vmem:[#allocation13 + $0x628] sm:$0xff] }
 0x35e   :  { %2608 = vmatpush1.bf16.msra.mxu1 %v3987_v60  ;;  %v1080_v60 = vld [vmem:[#allocation13 + $0x4a8] sm:$0xff] }
 0x35f   :  { %2609 = vmatprep.subr.bf16.mxu1 %v3996_v61  ;;  %v3933_v61 = vcombine.low %v941_v48, %v945_v49  ;;  %v4067_v5 = vcombine.low %v1076_v59, %v1080_v60  ;;  %v997_v48 = vld [vmem:[#allocation13 + $0x210] sm:$0xff] }
 0x360   :  { %v1001_v49 = vld [vmem:[#allocation13 + $0x230] sm:$0xff] }
 0x362   :  { %2610 = vmatpush1.bf16.msra.mxu1 %v3995_v0  ;;  %v4068_v0 = vcombine.high %v1076_v59, %v1080_v60  ;;  %v1009_v59 = vld [vmem:[#allocation13 + $0x270] sm:$0xff]  ;;  %v1132_v60 = vld [vmem:[#allocation13 + $0x648] sm:$0xff] }
 0x363   :  { %2611 = vmatprep.subr.bf16.mxu1 %v4004_v1  ;;  %v957_v1 = vld [vmem:[#allocation13 + $0xd0] sm:$0xff] }
 0x364   :  { %v3950_v6 = vcombine.high %v957_v1, %v961_v2  ;;  %v3949_v17 = vcombine.low %v957_v1, %v961_v2  ;;  %v1013_v2 = vld [vmem:[#allocation13 + $0x290] sm:$0xff] }
 0x366   :  { %2612 = vmatpush1.bf16.msra.mxu1 %v4003_v4  ;;  %v1088_v4 = vld [vmem:[#allocation13 + $0x4e8] sm:$0xff] }
 0x367   :  { %2613 = vmatprep.subr.bf16.mxu1 %v4012_v9  ;;  %v3941_v9 = vcombine.low %v949_v55, %v953_v58  ;;  %v4075_v18 = vcombine.low %v1084_v3, %v1088_v4  ;;  %v1005_v58 = vld [vmem:[#allocation13 + $0x250] sm:$0xff] }
 0x36a   :  { %2614 = vmatpush1.bf16.msra.mxu1 %v4011_v15  ;;  %v1092_v15 = vld [vmem:[#allocation13 + $0x508] sm:$0xff] }
 0x36b   :  { %2615 = vmatprep.subr.bf16.mxu1 %v4020_v16  ;;  %v1096_v16 = vld [vmem:[#allocation13 + $0x528] sm:$0xff] }
 0x36e   :  { %2616 = vmatpush1.bf16.msra.mxu1 %v4019_v19  ;;  %v3958_v19 = vcombine.high %v965_v13, %v969_v14 }
 0x36f   :  { %2617 = vmatprep.subr.bf16.mxu1 %v4028_v20  ;;  %v4084_v20 = vcombine.high %v1092_v15, %v1096_v16 }
 0x372   :  { %v912_v33 = vpop.f32.mrb[8].mxu1  ;;  %2618 = vmatpush1.bf16.msra.mxu1 %v4027_v25  ;;  %v1100_v25 = vld [vmem:[#allocation13 + $0x548] sm:$0xff] }
 0x373   :  { %v913_v35 = vadd.f32 %v912_v33, %v508_v26  ;;  %v914_v38 = vpop.f32.mrb[9].mxu1  ;;  %2619 = vmatprep.subr.bf16.mxu1 %v4036_v29  ;;  %v1104_v26 = vld [vmem:[#allocation13 + $0x568] sm:$0xff]  ;;  %v3957_v29 = vcombine.low %v965_v13, %v969_v14  ;;  %v981_v33 = vld [vmem:[#allocation13 + $0x190] sm:$0xff] }
 0x374   :  { %v915_v41 = vadd.f32 %v914_v38, %v512_v30  ;;  %v916_v42 = vpop.f32.mrb[10].mxu1  ;;  %v4083_v30 = vcombine.low %v1092_v15, %v1096_v16  ;;  %v4092_v32 = vcombine.high %v1100_v25, %v1104_v26  ;;  %v1112_v38 = vld [vmem:[#allocation13 + $0x5a8] sm:$0xff]  ;;  %v1021_v14 = vld [vmem:[#allocation13 + $0x2d0] sm:$0xff] }
 0x375   :  { %v921_v45 = vmul.f32 0.2, %v913_v35  ;;  %v917_v36 = vpop.f32.mrb[11].mxu1  ;;  %v1025_v15 = vld [vmem:[#allocation13 + $0x2f0] sm:$0xff]  ;;  %v1148_v16 = vld [vmem:[#allocation13 + $0x6c8] sm:$0xff] }
 0x376   :  { %v922_v37 = vmul.f32 0.2, %v915_v41  ;;  %2620 = vmatpush1.bf16.msra.mxu1 %v4035_v34  ;;  %v985_v34 = vld [vmem:[#allocation13 + $0x1b0] sm:$0xff]  ;;  %v1116_v36 = vld [vmem:[#allocation13 + $0x5c8] sm:$0xff] }
 0x377   :  { %v925_v46 = vmax.f32 %v913_v35, %v921_v45  ;;  %2621 = vmatprep.subr.bf16.mxu1 %v4044_v40  ;;  %v1108_v35 = vld [vmem:[#allocation13 + $0x588] sm:$0xff]  ;;  %v3965_v40 = vcombine.low %v973_v23, %v977_v24  ;;  %v3974_v42 = vcombine.high %v981_v33, %v985_v34  ;;  %v993_v45 = vld [vmem:[#allocation13 + $0x1f0] sm:$0xff] }
 0x378   :  { %v926_v47 = vmax.f32 %v915_v41, %v922_v37  ;;  %v4091_v41 = vcombine.low %v1100_v25, %v1104_v26  ;;  %v4100_v43 = vcombine.high %v1108_v35, %v1112_v38  ;;  %v1120_v37 = vld [vmem:[#allocation13 + $0x5e8] sm:$0xff]  ;;  %v1029_v24 = vld [vmem:[#allocation13 + $0x310] sm:$0xff] }
 0x379   :  { %v5176_v54 = vpack.c.bf16 %v925_v46, %v925_v46  ;;  %v4099_v46 = vcombine.low %v1108_v35, %v1112_v38  ;;  %v4107_v55 = vcombine.low %v1116_v36, %v1120_v37  ;;  %v1033_v25 = vld [vmem:[#allocation13 + $0x330] sm:$0xff]  ;;  %v1156_v26 = vld [vmem:[#allocation13 + $0x708] sm:$0xff] }
 0x37a   :  { %v5174_v52 = vpack.c.bf16 %v926_v47, %v926_v47  ;;  %2622 = vmatpush1.bf16.msra.mxu1 %v4043_v39  ;;  %v3973_v39 = vcombine.low %v981_v33, %v985_v34  ;;  %v4108_v47 = vcombine.high %v1116_v36, %v1120_v37  ;;  %v1037_v34 = vld [vmem:[#allocation13 + $0x350] sm:$0xff]  ;;  %v1164_v38 = vld [vmem:[#allocation13 + $0x748] sm:$0xff] }
 0x37b   :  { %2632 = vmatprep.subr.bf16.mxu1 %v4052_v12  ;;  %v3982_v12 = vcombine.high %v989_v44, %v993_v45  ;;  %v1041_v35 = vld [vmem:[#allocation13 + $0x370] sm:$0xff]  ;;  %v1172_v37 = vld [vmem:[#allocation13 + $0x788] sm:$0xff] }
 0x37c   :  { %2582 = vmatprep.mubr.bf16.mxu0 %v5174_v52  ;;  %v1049_v36 = vld [vmem:[#allocation13 + $0x3b0] sm:$0xff] }
 0x37d   :  { %2583 = vmatmul.mubr.bf16.vlgmr.msra.gmra.mrb[8].mxu0 %v5176_v54  ;;  %2624 = vmatmul.mubr.bf16.vlgmr.msra.gmra.mrb[16].mxu1 %v5158_v28 }
 0x37e   :  { %2674 = vmatpush1.bf16.msra.mxu0 %v3925_v11  ;;  %2633 = vmatpush1.bf16.msra.mxu1 %v4051_v53  ;;  %v4076_v11 = vcombine.high %v1084_v3, %v1088_v4  ;;  %v3981_v53 = vcombine.low %v989_v44, %v993_v45  ;;  %v1017_v3 = vld [vmem:[#allocation13 + $0x2b0] sm:$0xff]  ;;  %v1140_v4 = vld [vmem:[#allocation13 + $0x688] sm:$0xff] }
 0x37f   :  { %2664 = vmatprep.mubr.bf16.mxu1 %v5174_v52  ;;  %2705 = vmatprep.mubr.bf16.mxu0 %v5156_v27  ;;  %v1045_v45 = vld [vmem:[#allocation13 + $0x390] sm:$0xff] }
 0x380   :  { %2675 = vmatprep.subr.bf16.mxu0 %v3934_v56  ;;  %2634 = vmatprep.subr.bf16.mxu1 %v4060_v57  ;;  %v3990_v56 = vcombine.high %v997_v48, %v1001_v49  ;;  %v4116_v57 = vcombine.high %v1124_v50, %v1128_v51 }
 0x382   :  { %2676 = vmatpush1.bf16.msra.mxu0 %v3933_v61  ;;  %2635 = vmatpush1.bf16.msra.mxu1 %v4059_v62  ;;  %v1136_v61 = vld [vmem:[#allocation13 + $0x668] sm:$0xff]  ;;  %v3989_v62 = vcombine.low %v997_v48, %v1001_v49  ;;  %v1053_v49 = vld [vmem:[#allocation13 + $0x3d0] sm:$0xff] }
 0x383   :  { %2677 = vmatprep.subr.bf16.mxu0 %v3942_v63  ;;  %2636 = vmatprep.subr.bf16.mxu1 %v4068_v0  ;;  %v4115_v63 = vcombine.low %v1124_v50, %v1128_v51  ;;  %v3998_v0 = vcombine.high %v1005_v58, %v1009_v59  ;;  %v4124_v1 = vcombine.high %v1132_v60, %v1136_v61  ;;  %v1057_v50 = vld [vmem:[#allocation13 + $0x3f0] sm:$0xff]  ;;  %v1180_v51 = vld [vmem:[#allocation13 + $0x7c8] sm:$0xff] }
 0x386   :  { %2678 = vmatpush1.bf16.msra.mxu0 %v3941_v9  ;;  %2637 = vmatpush1.bf16.msra.mxu1 %v4067_v5  ;;  %v1144_v9 = vld [vmem:[#allocation13 + $0x6a8] sm:$0xff]  ;;  %v3997_v5 = vcombine.low %v1005_v58, %v1009_v59  ;;  %v1061_v59 = vld [vmem:[#allocation13 + $0x410] sm:$0xff] }
 0x387   :  { %2679 = vmatprep.subr.bf16.mxu0 %v3950_v6  ;;  %2638 = vmatprep.subr.bf16.mxu1 %v4076_v11  ;;  %v4123_v6 = vcombine.low %v1132_v60, %v1136_v61  ;;  %v4006_v11 = vcombine.high %v1013_v2, %v1017_v3  ;;  %v4132_v13 = vcombine.high %v1140_v4, %v1144_v9  ;;  %v1065_v60 = vld [vmem:[#allocation13 + $0x430] sm:$0xff]  ;;  %v934_v61 = vld [vmem:[#allocation13 + $0x18] sm:$0xff] }
 0x38a   :  { %2680 = vmatpush1.bf16.msra.mxu0 %v3949_v17  ;;  %2639 = vmatpush1.bf16.msra.mxu1 %v4075_v18  ;;  %v1152_v17 = vld [vmem:[#allocation13 + $0x6e8] sm:$0xff]  ;;  %v4005_v18 = vcombine.low %v1013_v2, %v1017_v3  ;;  %v1069_v3 = vld [vmem:[#allocation13 + $0x450] sm:$0xff] }
 0x38b   :  { %2681 = vmatprep.subr.bf16.mxu0 %v3958_v19  ;;  %2640 = vmatprep.subr.bf16.mxu1 %v4084_v20  ;;  %v4131_v19 = vcombine.low %v1140_v4, %v1144_v9  ;;  %v4014_v20 = vcombine.high %v1021_v14, %v1025_v15  ;;  %v4140_v23 = vcombine.high %v1148_v16, %v1152_v17  ;;  %v1073_v4 = vld [vmem:[#allocation13 + $0x470] sm:$0xff]  ;;  %v942_v9 = vld [vmem:[#allocation13 + $0x58] sm:$0xff] }
 0x38e   :  { %2682 = vmatpush1.bf16.msra.mxu0 %v3957_v29  ;;  %2641 = vmatpush1.bf16.msra.mxu1 %v4083_v30  ;;  %v1160_v29 = vld [vmem:[#allocation13 + $0x728] sm:$0xff]  ;;  %v4013_v30 = vcombine.low %v1021_v14, %v1025_v15  ;;  %v1077_v15 = vld [vmem:[#allocation13 + $0x490] sm:$0xff] }
 0x38f   :  { %2683 = vmatprep.subr.bf16.mxu0 %v3966_v31  ;;  %2642 = vmatprep.subr.bf16.mxu1 %v4092_v32  ;;  %v4139_v31 = vcombine.low %v1148_v16, %v1152_v17  ;;  %v4022_v32 = vcombine.high %v1029_v24, %v1033_v25  ;;  %v4148_v33 = vcombine.high %v1156_v26, %v1160_v29  ;;  %v1081_v16 = vld [vmem:[#allocation13 + $0x4b0] sm:$0xff]  ;;  %v950_v17 = vld [vmem:[#allocation13 + $0x98] sm:$0xff] }
 0x392   :  { %2684 = vmatpush1.bf16.msra.mxu0 %v3965_v40  ;;  %2643 = vmatpush1.bf16.msra.mxu1 %v4091_v41  ;;  %v1168_v40 = vld [vmem:[#allocation13 + $0x768] sm:$0xff]  ;;  %v4021_v41 = vcombine.low %v1029_v24, %v1033_v25  ;;  %v1085_v25 = vld [vmem:[#allocation13 + $0x4d0] sm:$0xff] }
 0x393   :  { %2685 = vmatprep.subr.bf16.mxu0 %v3974_v42  ;;  %2644 = vmatprep.subr.bf16.mxu1 %v4100_v43  ;;  %v4147_v42 = vcombine.low %v1156_v26, %v1160_v29  ;;  %v4030_v43 = vcombine.high %v1037_v34, %v1041_v35  ;;  %v4156_v44 = vcombine.high %v1164_v38, %v1168_v40  ;;  %v1089_v26 = vld [vmem:[#allocation13 + $0x4f0] sm:$0xff]  ;;  %v958_v29 = vld [vmem:[#allocation13 + $0xd8] sm:$0xff] }
 0x396   :  { %2686 = vmatpush1.bf16.msra.mxu0 %v3973_v39  ;;  %2645 = vmatpush1.bf16.msra.mxu1 %v4099_v46  ;;  %v1176_v39 = vld [vmem:[#allocation13 + $0x7a8] sm:$0xff]  ;;  %v4029_v46 = vcombine.low %v1037_v34, %v1041_v35  ;;  %v1093_v35 = vld [vmem:[#allocation13 + $0x510] sm:$0xff] }
 0x397   :  { %2687 = vmatprep.subr.bf16.mxu0 %v3982_v12  ;;  %2646 = vmatprep.subr.bf16.mxu1 %v4108_v47  ;;  %v4155_v12 = vcombine.low %v1164_v38, %v1168_v40  ;;  %v4038_v47 = vcombine.high %v1045_v45, %v1049_v36  ;;  %v4164_v48 = vcombine.high %v1172_v37, %v1176_v39  ;;  %v1097_v38 = vld [vmem:[#allocation13 + $0x530] sm:$0xff]  ;;  %v970_v40 = vld [vmem:[#allocation13 + $0x138] sm:$0xff] }
 0x39a   :  { %2688 = vmatpush1.bf16.msra.mxu0 %v3981_v53  ;;  %2647 = vmatpush1.bf16.msra.mxu1 %v4107_v55  ;;  %v1184_v53 = vld [vmem:[#allocation13 + $0x7e8] sm:$0xff]  ;;  %v4037_v55 = vcombine.low %v1045_v45, %v1049_v36  ;;  %v1101_v45 = vld [vmem:[#allocation13 + $0x550] sm:$0xff] }
 0x39b   :  { %2689 = vmatprep.subr.bf16.mxu0 %v3990_v56  ;;  %2648 = vmatprep.subr.bf16.mxu1 %v4116_v57  ;;  %v4163_v56 = vcombine.low %v1172_v37, %v1176_v39  ;;  %v4046_v57 = vcombine.high %v1053_v49, %v1057_v50  ;;  %v4172_v58 = vcombine.high %v1180_v51, %v1184_v53  ;;  %v1105_v36 = vld [vmem:[#allocation13 + $0x570] sm:$0xff]  ;;  %v974_v37 = vld [vmem:[#allocation13 + $0x158] sm:$0xff] }
 0x39c   :  { %v978_v39 = vld [vmem:[#allocation13 + $0x178] sm:$0xff] }
 0x39e   :  { %2690 = vmatpush1.bf16.msra.mxu0 %v3989_v62  ;;  %2649 = vmatpush1.bf16.msra.mxu1 %v4115_v63  ;;  %v938_v62 = vld [vmem:[#allocation13 + $0x38] sm:$0xff]  ;;  %v4045_v63 = vcombine.low %v1053_v49, %v1057_v50  ;;  %v1109_v49 = vld [vmem:[#allocation13 + $0x590] sm:$0xff] }
 0x39f   :  { %2691 = vmatprep.subr.bf16.mxu0 %v3998_v0  ;;  %2650 = vmatprep.subr.bf16.mxu1 %v4124_v1  ;;  %v4171_v0 = vcombine.low %v1180_v51, %v1184_v53  ;;  %v4054_v1 = vcombine.high %v1061_v59, %v1065_v60  ;;  %v3928_v2 = vcombine.high %v934_v61, %v938_v62  ;;  %v1113_v50 = vld [vmem:[#allocation13 + $0x5b0] sm:$0xff]  ;;  %v982_v51 = vld [vmem:[#allocation13 + $0x198] sm:$0xff] }
 0x3a0   :  { %v986_v53 = vld [vmem:[#allocation13 + $0x1b8] sm:$0xff] }
 0x3a2   :  { %2692 = vmatpush1.bf16.msra.mxu0 %v3997_v5  ;;  %2651 = vmatpush1.bf16.msra.mxu1 %v4123_v6  ;;  %v946_v5 = vld [vmem:[#allocation13 + $0x78] sm:$0xff]  ;;  %v4053_v6 = vcombine.low %v1061_v59, %v1065_v60  ;;  %v1117_v59 = vld [vmem:[#allocation13 + $0x5d0] sm:$0xff] }
 0x3a3   :  { %2693 = vmatprep.subr.bf16.mxu0 %v4006_v11  ;;  %2652 = vmatprep.subr.bf16.mxu1 %v4132_v13  ;;  %v3927_v11 = vcombine.low %v934_v61, %v938_v62  ;;  %v4062_v13 = vcombine.high %v1069_v3, %v1073_v4  ;;  %v3936_v14 = vcombine.high %v942_v9, %v946_v5  ;;  %v1121_v60 = vld [vmem:[#allocation13 + $0x5f0] sm:$0xff]  ;;  %v990_v61 = vld [vmem:[#allocation13 + $0x1d8] sm:$0xff] }
 0x3a4   :  { %v994_v62 = vld [vmem:[#allocation13 + $0x1f8] sm:$0xff] }
 0x3a6   :  { %2694 = vmatpush1.bf16.msra.mxu0 %v4005_v18  ;;  %2653 = vmatpush1.bf16.msra.mxu1 %v4131_v19  ;;  %v954_v18 = vld [vmem:[#allocation13 + $0xb8] sm:$0xff]  ;;  %v4061_v19 = vcombine.low %v1069_v3, %v1073_v4  ;;  %v1125_v3 = vld [vmem:[#allocation13 + $0x610] sm:$0xff] }
 0x3a7   :  { %2695 = vmatprep.subr.bf16.mxu0 %v4014_v20  ;;  %2654 = vmatprep.subr.bf16.mxu1 %v4140_v23  ;;  %v3935_v20 = vcombine.low %v942_v9, %v946_v5  ;;  %v4070_v23 = vcombine.high %v1077_v15, %v1081_v16  ;;  %v3944_v24 = vcombine.high %v950_v17, %v954_v18  ;;  %v1129_v4 = vld [vmem:[#allocation13 + $0x630] sm:$0xff]  ;;  %v998_v9 = vld [vmem:[#allocation13 + $0x218] sm:$0xff] }
 0x3a8   :  { %v1002_v5 = vld [vmem:[#allocation13 + $0x238] sm:$0xff] }
 0x3aa   :  { %2696 = vmatpush1.bf16.msra.mxu0 %v4013_v30  ;;  %2655 = vmatpush1.bf16.msra.mxu1 %v4139_v31  ;;  %v962_v30 = vld [vmem:[#allocation13 + $0xf8] sm:$0xff]  ;;  %v4069_v31 = vcombine.low %v1077_v15, %v1081_v16  ;;  %v1133_v15 = vld [vmem:[#allocation13 + $0x650] sm:$0xff] }
 0x3ab   :  { %2697 = vmatprep.subr.bf16.mxu0 %v4022_v32  ;;  %2656 = vmatprep.subr.bf16.mxu1 %v4148_v33  ;;  %v3943_v32 = vcombine.low %v950_v17, %v954_v18  ;;  %v4078_v33 = vcombine.high %v1085_v25, %v1089_v26  ;;  %v3952_v34 = vcombine.high %v958_v29, %v962_v30  ;;  %v1137_v16 = vld [vmem:[#allocation13 + $0x670] sm:$0xff]  ;;  %v1006_v17 = vld [vmem:[#allocation13 + $0x258] sm:$0xff] }
 0x3ac   :  { %v1010_v18 = vld [vmem:[#allocation13 + $0x278] sm:$0xff] }
 0x3ae   :  { %2698 = vmatpush1.bf16.msra.mxu0 %v4021_v41  ;;  %2657 = vmatpush1.bf16.msra.mxu1 %v4147_v42  ;;  %v4077_v41 = vcombine.low %v1085_v25, %v1089_v26  ;;  %v3951_v42 = vcombine.low %v958_v29, %v962_v30  ;;  %v1141_v25 = vld [vmem:[#allocation13 + $0x690] sm:$0xff]  ;;  %v1014_v29 = vld [vmem:[#allocation13 + $0x298] sm:$0xff] }
 0x3af   :  { %2699 = vmatprep.subr.bf16.mxu0 %v4030_v43  ;;  %2658 = vmatprep.subr.bf16.mxu1 %v4156_v44  ;;  %v4086_v43 = vcombine.high %v1093_v35, %v1097_v38  ;;  %v1145_v26 = vld [vmem:[#allocation13 + $0x6b0] sm:$0xff]  ;;  %v1018_v30 = vld [vmem:[#allocation13 + $0x2b8] sm:$0xff] }
 0x3b2   :  { %2700 = vmatpush1.bf16.msra.mxu0 %v4029_v46  ;;  %2659 = vmatpush1.bf16.msra.mxu1 %v4155_v12  ;;  %v4085_v46 = vcombine.low %v1093_v35, %v1097_v38  ;;  %v1149_v35 = vld [vmem:[#allocation13 + $0x6d0] sm:$0xff] }
 0x3b3   :  { %2701 = vmatprep.subr.bf16.mxu0 %v4038_v47  ;;  %2660 = vmatprep.subr.bf16.mxu1 %v4164_v48  ;;  %v4094_v47 = vcombine.high %v1101_v45, %v1105_v36  ;;  %v3968_v48 = vcombine.high %v974_v37, %v978_v39  ;;  %v1153_v38 = vld [vmem:[#allocation13 + $0x6f0] sm:$0xff] }
 0x3b6   :  { %2702 = vmatpush1.bf16.msra.mxu0 %v4037_v55  ;;  %2661 = vmatpush1.bf16.msra.mxu1 %v4163_v56  ;;  %v4093_v55 = vcombine.low %v1101_v45, %v1105_v36  ;;  %v3967_v56 = vcombine.low %v974_v37, %v978_v39  ;;  %v1157_v45 = vld [vmem:[#allocation13 + $0x710] sm:$0xff]  ;;  %v1030_v37 = vld [vmem:[#allocation13 + $0x318] sm:$0xff] }
 0x3b7   :  { %2703 = vmatprep.subr.bf16.mxu0 %v4046_v57  ;;  %2662 = vmatprep.subr.bf16.mxu1 %v4172_v58  ;;  %v4102_v57 = vcombine.high %v1109_v49, %v1113_v50  ;;  %v3976_v58 = vcombine.high %v982_v51, %v986_v53  ;;  %v1161_v36 = vld [vmem:[#allocation13 + $0x730] sm:$0xff]  ;;  %v1034_v39 = vld [vmem:[#allocation13 + $0x338] sm:$0xff] }
 0x3ba   :  { %2704 = vmatpush1.bf16.msra.mxu0 %v4045_v63  ;;  %2663 = vmatpush1.bf16.msra.mxu1 %v4171_v0  ;;  %v4101_v63 = vcombine.low %v1109_v49, %v1113_v50  ;;  %v3975_v0 = vcombine.low %v982_v51, %v986_v53  ;;  %v1165_v49 = vld [vmem:[#allocation13 + $0x750] sm:$0xff]  ;;  %v1038_v51 = vld [vmem:[#allocation13 + $0x358] sm:$0xff] }
 0x3bb   :  { %2714 = vmatprep.subr.bf16.mxu0 %v4054_v1  ;;  %2755 = vmatprep.subr.bf16.mxu1 %v3928_v2  ;;  %v4110_v1 = vcombine.high %v1117_v59, %v1121_v60  ;;  %v3984_v2 = vcombine.high %v990_v61, %v994_v62  ;;  %v1169_v50 = vld [vmem:[#allocation13 + $0x770] sm:$0xff]  ;;  %v1042_v53 = vld [vmem:[#allocation13 + $0x378] sm:$0xff] }
 0x3bd   :  { %2706 = vmatmul.mubr.bf16.vlgmr.msra.gmra.mrb[12].mxu0 %v5158_v28  ;;  %2665 = vmatmul.mubr.bf16.vlgmr.msra.gmra.mrb[16].mxu1 %v5176_v54 }
 0x3be   :  { %2715 = vmatpush1.bf16.msra.mxu0 %v4053_v6  ;;  %2746 = vmatprep.mubr.bf16.mxu0 %v5174_v52  ;;  %v4109_v6 = vcombine.low %v1117_v59, %v1121_v60  ;;  %v1173_v59 = vld [vmem:[#allocation13 + $0x790] sm:$0xff] }
 0x3bf   :  { %2756 = vmatpush1.bf16.msra.mxu1 %v3927_v11  ;;  %2787 = vmatprep.mubr.bf16.mxu1 %v5156_v27  ;;  %v966_v27 = vld [vmem:[#allocation13 + $0x118] sm:$0xff]  ;;  %v3983_v11 = vcombine.low %v990_v61, %v994_v62  ;;  %v1177_v60 = vld [vmem:[#allocation13 + $0x7b0] sm:$0xff] }
 0x3c0   :  { %2716 = vmatprep.subr.bf16.mxu0 %v4062_v13  ;;  %2757 = vmatprep.subr.bf16.mxu1 %v3936_v14  ;;  %v3960_v44 = vcombine.high %v966_v27, %v970_v40  ;;  %v3959_v12 = vcombine.low %v966_v27, %v970_v40  ;;  %v4118_v13 = vcombine.high %v1125_v3, %v1129_v4  ;;  %v1022_v27 = vld [vmem:[#allocation13 + $0x2d8] sm:$0xff] }
 0x3c1   :  { %v3992_v14 = vcombine.high %v998_v9, %v1002_v5  ;;  %v1026_v40 = vld [vmem:[#allocation13 + $0x2f8] sm:$0xff] }
 0x3c2   :  { %2717 = vmatpush1.bf16.msra.mxu0 %v4061_v19  ;;  %v4117_v19 = vcombine.low %v1125_v3, %v1129_v4  ;;  %v1046_v61 = vld [vmem:[#allocation13 + $0x398] sm:$0xff]  ;;  %v1181_v3 = vld [vmem:[#allocation13 + $0x7d0] sm:$0xff] }
 0x3c3   :  { %2758 = vmatpush1.bf16.msra.mxu1 %v3935_v20  ;;  %2718 = vmatprep.subr.bf16.mxu0 %v4070_v23  ;;  %v3991_v20 = vcombine.low %v998_v9, %v1002_v5  ;;  %v4126_v23 = vcombine.high %v1133_v15, %v1137_v16  ;;  %v1050_v62 = vld [vmem:[#allocation13 + $0x3b8] sm:$0xff]  ;;  %v1185_v4 = vld [vmem:[#allocation13 + $0x7f0] sm:$0xff] }
 0x3c4   :  { %2759 = vmatprep.subr.bf16.mxu1 %v3944_v24  ;;  %v4000_v24 = vcombine.high %v1006_v17, %v1010_v18  ;;  %v1054_v9 = vld [vmem:[#allocation13 + $0x3d8] sm:$0xff] }
 0x3c5   :  { %v1058_v5 = vld [vmem:[#allocation13 + $0x3f8] sm:$0xff] }
 0x3c6   :  { %2719 = vmatpush1.bf16.msra.mxu0 %v4069_v31  ;;  %v4125_v31 = vcombine.low %v1133_v15, %v1137_v16  ;;  %v1062_v15 = vld [vmem:[#allocation13 + $0x418] sm:$0xff] }
 0x3c7   :  { %2760 = vmatpush1.bf16.msra.mxu1 %v3943_v32  ;;  %2720 = vmatprep.subr.bf16.mxu0 %v4078_v33  ;;  %v3999_v32 = vcombine.low %v1006_v17, %v1010_v18  ;;  %v4134_v33 = vcombine.high %v1141_v25, %v1145_v26  ;;  %v1066_v16 = vld [vmem:[#allocation13 + $0x438] sm:$0xff]  ;;  %v4173_v17 = vcombine.low %v1181_v3, %v1185_v4 }
 0x3c8   :  { %2761 = vmatprep.subr.bf16.mxu1 %v3952_v34  ;;  %v4008_v34 = vcombine.high %v1014_v29, %v1018_v30  ;;  %v4047_v18 = vcombine.low %v1054_v9, %v1058_v5 }
 0x3ca   :  { %2721 = vmatpush1.bf16.msra.mxu0 %v4077_v41  ;;  %v4133_v41 = vcombine.low %v1141_v25, %v1145_v26  ;;  %v4505_v25 = vld [vmem:[#allocation14] ss:$8 sps:$4 sm:$0xff]   ;;  %v4055_v26 = vcombine.low %v1062_v15, %v1066_v16 }
 0x3cb   :  { %2762 = vmatpush1.bf16.msra.mxu1 %v3951_v42  ;;  %2722 = vmatprep.subr.bf16.mxu0 %v4086_v43  ;;  %v4007_v42 = vcombine.low %v1014_v29, %v1018_v30  ;;  %v4142_v43 = vcombine.high %v1149_v35, %v1153_v38  ;;  %v4510_v30 = vld [vmem:[#allocation14 + $0x14] ss:$8 sps:$4 sm:$0xff]  }
 0x3cc   :  { %2763 = vmatprep.subr.bf16.mxu1 %v3960_v44  ;;  %v4016_v44 = vcombine.high %v1022_v27, %v1026_v40 }
 0x3ce   :  { %2723 = vmatpush1.bf16.msra.mxu0 %v4085_v46  ;;  %v4141_v46 = vcombine.low %v1149_v35, %v1153_v38  ;;  %v4513_v35 = vld [vmem:[#allocation14 + $0x24] ss:$8 sps:$4 sm:$0xff]  }
 0x3cf   :  { %2764 = vmatpush1.bf16.msra.mxu1 %v3959_v12  ;;  %2724 = vmatprep.subr.bf16.mxu0 %v4094_v47  ;;  %v4015_v12 = vcombine.low %v1022_v27, %v1026_v40  ;;  %v4150_v47 = vcombine.high %v1157_v45, %v1161_v36  ;;  %v1086_v27 = vld [vmem:[#allocation13 + $0x4d8] sm:$0xff] }
 0x3d0   :  { %2765 = vmatprep.subr.bf16.mxu1 %v3968_v48  ;;  %v4024_v48 = vcombine.high %v1030_v37, %v1034_v39  ;;  %v1090_v40 = vld [vmem:[#allocation13 + $0x4f8] sm:$0xff] }
 0x3d2   :  { %2725 = vmatpush1.bf16.msra.mxu0 %v4093_v55  ;;  %v4149_v55 = vcombine.low %v1157_v45, %v1161_v36  ;;  %v1098_v45 = vld [vmem:[#allocation13 + $0x538] sm:$0xff] }
 0x3d3   :  { %2766 = vmatpush1.bf16.msra.mxu1 %v3967_v56  ;;  %2726 = vmatprep.subr.bf16.mxu0 %v4102_v57  ;;  %v4023_v56 = vcombine.low %v1030_v37, %v1034_v39  ;;  %v4158_v57 = vcombine.high %v1165_v49, %v1169_v50  ;;  %v4514_v36 = vld [vmem:[#allocation14 + $0x30] ss:$8 sps:$4 sm:$0xff]   ;;  %v4519_v37 = vld [vmem:[#allocation14 + $0x44] ss:$8 sps:$4 sm:$0xff]  }
 0x3d4   :  { %2767 = vmatprep.subr.bf16.mxu1 %v3976_v58  ;;  %v4032_v58 = vcombine.high %v1038_v51, %v1042_v53 }
 0x3d6   :  { %2727 = vmatpush1.bf16.msra.mxu0 %v4101_v63  ;;  %v4157_v63 = vcombine.low %v1165_v49, %v1169_v50  ;;  %v4522_v49 = vld [vmem:[#allocation14 + $0x54] ss:$8 sps:$4 sm:$0xff]  }
 0x3d7   :  { %2768 = vmatpush1.bf16.msra.mxu1 %v3975_v0  ;;  %2728 = vmatprep.subr.bf16.mxu0 %v4110_v1  ;;  %v4031_v0 = vcombine.low %v1038_v51, %v1042_v53  ;;  %v4166_v1 = vcombine.high %v1173_v59, %v1177_v60  ;;  %v1110_v51 = vld [vmem:[#allocation13 + $0x598] sm:$0xff] }
 0x3d8   :  { %2769 = vmatprep.subr.bf16.mxu1 %v3984_v2  ;;  %v4040_v2 = vcombine.high %v1046_v61, %v1050_v62  ;;  %v1114_v53 = vld [vmem:[#allocation13 + $0x5b8] sm:$0xff] }
 0x3da   :  { %2729 = vmatpush1.bf16.msra.mxu0 %v4109_v6  ;;  %v4165_v6 = vcombine.low %v1173_v59, %v1177_v60  ;;  %v4104_v59 = vcombine.high %v1110_v51, %v1114_v53 }
 0x3db   :  { %2770 = vmatpush1.bf16.msra.mxu1 %v3983_v11  ;;  %2730 = vmatprep.subr.bf16.mxu0 %v4118_v13  ;;  %v4039_v11 = vcombine.low %v1046_v61, %v1050_v62  ;;  %v4174_v13 = vcombine.high %v1181_v3, %v1185_v4  ;;  %v1118_v61 = vld [vmem:[#allocation13 + $0x5d8] sm:$0xff] }
 0x3dc   :  { %2771 = vmatprep.subr.bf16.mxu1 %v3992_v14  ;;  %v4048_v14 = vcombine.high %v1054_v9, %v1058_v5  ;;  %v1122_v62 = vld [vmem:[#allocation13 + $0x5f8] sm:$0xff] }
 0x3dd   :  { %v4528_v3 = vld [vmem:[#allocation14 + $0x74] ss:$8 sps:$4 sm:$0xff]   ;;  %v4112_v4 = vcombine.high %v1118_v61, %v1122_v62 }
 0x3de   :  { %2731 = vmatpush1.bf16.msra.mxu0 %v4117_v19  ;;  %v4507_v19 = vld [vmem:[#allocation14 + $0x4] ss:$8 sps:$4 sm:$0xff]   ;;  %v1126_v9 = vld [vmem:[#allocation13 + $0x618] sm:$0xff] }
 0x3df   :  { %2772 = vmatpush1.bf16.msra.mxu1 %v3991_v20  ;;  %2732 = vmatprep.subr.bf16.mxu0 %v4126_v23  ;;  %v4056_v20 = vcombine.high %v1062_v15, %v1066_v16  ;;  %v1070_v23 = vld [vmem:[#allocation13 + $0x458] sm:$0xff] }
 0x3e0   :  { %2773 = vmatprep.subr.bf16.mxu1 %v4000_v24  ;;  %v1074_v24 = vld [vmem:[#allocation13 + $0x478] sm:$0xff] }
 0x3e1   :  { %v4064_v29 = vcombine.high %v1070_v23, %v1074_v24  ;;  %v1130_v5 = vld [vmem:[#allocation13 + $0x638] sm:$0xff] }
 0x3e2   :  { %2733 = vmatpush1.bf16.msra.mxu0 %v4125_v31  ;;  %v1078_v31 = vld [vmem:[#allocation13 + $0x498] sm:$0xff] }
 0x3e3   :  { %2774 = vmatpush1.bf16.msra.mxu1 %v3999_v32  ;;  %2734 = vmatprep.subr.bf16.mxu0 %v4134_v33  ;;  %v1082_v32 = vld [vmem:[#allocation13 + $0x4b8] sm:$0xff] }
 0x3e4   :  { %2775 = vmatprep.subr.bf16.mxu1 %v4008_v34  ;;  %v4508_v33 = vld [vmem:[#allocation14 + $0x10] ss:$8 sps:$4 sm:$0xff]   ;;  %v4063_v34 = vcombine.low %v1070_v23, %v1074_v24  ;;  %v4072_v38 = vcombine.high %v1078_v31, %v1082_v32 }
 0x3e5   :  { %v1134_v15 = vld [vmem:[#allocation13 + $0x658] sm:$0xff] }
 0x3e6   :  { %2735 = vmatpush1.bf16.msra.mxu0 %v4133_v41  ;;  %v4511_v41 = vld [vmem:[#allocation14 + $0x20] ss:$8 sps:$4 sm:$0xff]   ;;  %v1138_v16 = vld [vmem:[#allocation13 + $0x678] sm:$0xff] }
 0x3e7   :  { %2776 = vmatpush1.bf16.msra.mxu1 %v4007_v42  ;;  %2736 = vmatprep.subr.bf16.mxu0 %v4142_v43  ;;  %v4071_v42 = vcombine.low %v1078_v31, %v1082_v32  ;;  %v4516_v43 = vld [vmem:[#allocation14 + $0x34] ss:$8 sps:$4 sm:$0xff]  }
 0x3e8   :  { %2777 = vmatprep.subr.bf16.mxu1 %v4016_v44  ;;  %v1094_v44 = vld [vmem:[#allocation13 + $0x518] sm:$0xff] }
 0x3e9   :  { %v4088_v39 = vcombine.high %v1094_v44, %v1098_v45  ;;  %v1142_v23 = vld [vmem:[#allocation13 + $0x698] sm:$0xff] }
 0x3ea   :  { %2737 = vmatpush1.bf16.msra.mxu0 %v4141_v46  ;;  %v1102_v46 = vld [vmem:[#allocation13 + $0x558] sm:$0xff] }
 0x3eb   :  { %2778 = vmatpush1.bf16.msra.mxu1 %v4015_v12  ;;  %2738 = vmatprep.subr.bf16.mxu0 %v4150_v47  ;;  %v1106_v12 = vld [vmem:[#allocation13 + $0x578] sm:$0xff]  ;;  %v4517_v47 = vld [vmem:[#allocation14 + $0x40] ss:$8 sps:$4 sm:$0xff]  }
 0x3ec   :  { %2779 = vmatprep.subr.bf16.mxu1 %v4024_v48  ;;  %v4087_v48 = vcombine.low %v1094_v44, %v1098_v45  ;;  %v4096_v50 = vcombine.high %v1102_v46, %v1106_v12  ;;  %v1146_v24 = vld [vmem:[#allocation13 + $0x6b8] sm:$0xff] }
 0x3ed   :  { %v1150_v31 = vld [vmem:[#allocation13 + $0x6d8] sm:$0xff] }
 0x3ee   :  { %2739 = vmatpush1.bf16.msra.mxu0 %v4149_v55  ;;  %v4520_v55 = vld [vmem:[#allocation14 + $0x50] ss:$8 sps:$4 sm:$0xff]  }
 0x3ef   :  { %2780 = vmatpush1.bf16.msra.mxu1 %v4023_v56  ;;  %2740 = vmatprep.subr.bf16.mxu0 %v4158_v57  ;;  %v4095_v56 = vcombine.low %v1102_v46, %v1106_v12  ;;  %v4525_v57 = vld [vmem:[#allocation14 + $0x64] ss:$8 sps:$4 sm:$0xff]   ;;  %v1154_v32 = vld [vmem:[#allocation13 + $0x6f8] sm:$0xff] }
 0x3f0   :  { %2781 = vmatprep.subr.bf16.mxu1 %v4032_v58  ;;  %v1166_v44 = vld [vmem:[#allocation13 + $0x758] sm:$0xff] }
 0x3f1   :  { %v1170_v45 = vld [vmem:[#allocation13 + $0x778] sm:$0xff] }
 0x3f2   :  { %2741 = vmatpush1.bf16.msra.mxu0 %v4157_v63  ;;  %v1174_v46 = vld [vmem:[#allocation13 + $0x798] sm:$0xff] }
 0x3f3   :  { %2782 = vmatpush1.bf16.msra.mxu1 %v4031_v0  ;;  %2742 = vmatprep.subr.bf16.mxu0 %v4166_v1  ;;  %v4523_v0 = vld [vmem:[#allocation14 + $0x60] ss:$8 sps:$4 sm:$0xff]   ;;  %v1178_v12 = vld [vmem:[#allocation13 + $0x7b8] sm:$0xff] }
 0x3f4   :  { %2783 = vmatprep.subr.bf16.mxu1 %v4040_v2  ;;  %v4103_v2 = vcombine.low %v1110_v51, %v1114_v53  ;;  %v1182_v51 = vld [vmem:[#allocation13 + $0x7d8] sm:$0xff] }
 0x3f5   :  { %v1186_v53 = vld [vmem:[#allocation13 + $0x7f8] sm:$0xff] }
 0x3f6   :  { %2743 = vmatpush1.bf16.msra.mxu0 %v4165_v6  ;;  %v4526_v6 = vld [vmem:[#allocation14 + $0x70] ss:$8 sps:$4 sm:$0xff]  }
 0x3f7   :  { %2784 = vmatpush1.bf16.msra.mxu1 %v4039_v11  ;;  %2744 = vmatprep.subr.bf16.mxu0 %v4174_v13  ;;  %v4111_v11 = vcombine.low %v1118_v61, %v1122_v62  ;;  %v4531_v13 = vld [vmem:[#allocation14 + $0x84] ss:$8 sps:$4 sm:$0xff]   ;;  %v4550_v61 = vld [vmem:[#allocation14 + $0xf0] ss:$8 sps:$4 sm:$0xff]   ;;  %v4175_v62 = vcombine.low %v1182_v51, %v1186_v53 }
 0x3f8   :  { %2785 = vmatprep.subr.bf16.mxu1 %v4048_v14  ;;  %v4120_v14 = vcombine.high %v1126_v9, %v1130_v5 }
 0x3fa   :  { %2745 = vmatpush1.bf16.msra.mxu0 %v4173_v17  ;;  %v4529_v17 = vld [vmem:[#allocation14 + $0x80] ss:$8 sps:$4 sm:$0xff]  }
 0x3fb   :  { %2786 = vmatpush1.bf16.msra.mxu1 %v4047_v18  ;;  %3641 = vmatprep.subr.bf16.mxu0 %v4507_v19  ;;  %v4119_v18 = vcombine.low %v1126_v9, %v1130_v5  ;;  %v4534_v19 = vld [vmem:[#allocation14 + $0x94] ss:$8 sps:$4 sm:$0xff]  }
 0x3fc   :  { %2796 = vmatprep.subr.bf16.mxu1 %v4056_v20  ;;  %v4128_v20 = vcombine.high %v1134_v15, %v1138_v16 }
 0x3fd   :  { %2747 = vmatmul.mubr.bf16.vlgmr.msra.gmra.mrb[12].mxu0 %v5176_v54 }
 0x3fe   :  { %2788 = vmatmul.mubr.bf16.vlgmr.msra.gmra.mrb[20].mxu1 %v5158_v28  ;;  %3642 = vmatpush1.bf16.msra.mxu0 %v4505_v25  ;;  %v4080_v28 = vcombine.high %v1086_v27, %v1090_v40  ;;  %v4532_v25 = vld [vmem:[#allocation14 + $0x90] ss:$8 sps:$4 sm:$0xff]  }
 0x3ff   :  { %2797 = vmatpush1.bf16.msra.mxu1 %v4055_v26  ;;  %2828 = vmatprep.mubr.bf16.mxu1 %v5174_v52  ;;  %v4079_v52 = vcombine.low %v1086_v27, %v1090_v40  ;;  %v4127_v26 = vcombine.low %v1134_v15, %v1138_v16  ;;  %v1158_v27 = vld [vmem:[#allocation13 + $0x718] sm:$0xff] }
 0x400   :  { %2798 = vmatprep.subr.bf16.mxu1 %v4064_v29  ;;  %3643 = vmatprep.subr.bf16.mxu0 %v4510_v30  ;;  %v4537_v29 = vld [vmem:[#allocation14 + $0xa4] ss:$8 sps:$4 sm:$0xff]   ;;  %v4136_v30 = vcombine.high %v1142_v23, %v1146_v24  ;;  %v1162_v40 = vld [vmem:[#allocation13 + $0x738] sm:$0xff] }
 0x402   :  { %3644 = vmatpush1.bf16.msra.mxu0 %v4508_v33  ;;  %v4535_v33 = vld [vmem:[#allocation14 + $0xa0] ss:$8 sps:$4 sm:$0xff]  }
 0x403   :  { %2799 = vmatpush1.bf16.msra.mxu1 %v4063_v34  ;;  %3645 = vmatprep.subr.bf16.mxu0 %v4513_v35  ;;  %v4135_v34 = vcombine.low %v1142_v23, %v1146_v24  ;;  %v4540_v35 = vld [vmem:[#allocation14 + $0xb4] ss:$8 sps:$4 sm:$0xff]   ;;  %v4559_v24 = vld [vmem:[#allocation14 + $0x120] ss:$8 sps:$4 sm:$0xff]  }
 0x404   :  { %2800 = vmatprep.subr.bf16.mxu1 %v4072_v38  ;;  %v4144_v38 = vcombine.high %v1150_v31, %v1154_v32  ;;  %v4558_v23 = vld [vmem:[#allocation14 + $0x114] ss:$8 sps:$4 sm:$0xff]  }
 0x406   :  { %3646 = vmatpush1.bf16.msra.mxu0 %v4511_v41  ;;  %v4538_v41 = vld [vmem:[#allocation14 + $0xb0] ss:$8 sps:$4 sm:$0xff]  }
 0x407   :  { %2801 = vmatpush1.bf16.msra.mxu1 %v4071_v42  ;;  %3647 = vmatprep.subr.bf16.mxu0 %v4516_v43  ;;  %v4143_v42 = vcombine.low %v1150_v31, %v1154_v32  ;;  %v4543_v43 = vld [vmem:[#allocation14 + $0xc4] ss:$8 sps:$4 sm:$0xff]   ;;  %v4570_v31 = vld [vmem:[#allocation14 + $0x154] ss:$8 sps:$4 sm:$0xff]   ;;  %v4568_v32 = vld [vmem:[#allocation14 + $0x150] ss:$8 sps:$4 sm:$0xff]  }
 0x408   :  { %2802 = vmatprep.subr.bf16.mxu1 %v4080_v28  ;;  %v4152_v28 = vcombine.high %v1158_v27, %v1162_v40 }
 0x40a   :  { %3648 = vmatpush1.bf16.msra.mxu0 %v4514_v36  ;;  %v4541_v36 = vld [vmem:[#allocation14 + $0xc0] ss:$8 sps:$4 sm:$0xff]  }
 0x40b   :  { %2803 = vmatpush1.bf16.msra.mxu1 %v4079_v52  ;;  %3649 = vmatprep.subr.bf16.mxu0 %v4519_v37  ;;  %v4151_v52 = vcombine.low %v1158_v27, %v1162_v40  ;;  %v4546_v37 = vld [vmem:[#allocation14 + $0xd4] ss:$8 sps:$4 sm:$0xff]   ;;  %v4579_v27 = vld [vmem:[#allocation14 + $0x184] ss:$8 sps:$4 sm:$0xff]   ;;  %v4577_v40 = vld [vmem:[#allocation14 + $0x180] ss:$8 sps:$4 sm:$0xff]  }
 0x40c   :  { %2804 = vmatprep.subr.bf16.mxu1 %v4088_v39  ;;  %v4160_v39 = vcombine.high %v1166_v44, %v1170_v45 }
 0x40e   :  { %3650 = vmatpush1.bf16.msra.mxu0 %v4517_v47  ;;  %v4544_v47 = vld [vmem:[#allocation14 + $0xd0] ss:$8 sps:$4 sm:$0xff]  }
 0x40f   :  { %2805 = vmatpush1.bf16.msra.mxu1 %v4087_v48  ;;  %3651 = vmatprep.subr.bf16.mxu0 %v4522_v49  ;;  %v4159_v48 = vcombine.low %v1166_v44, %v1170_v45  ;;  %v4549_v49 = vld [vmem:[#allocation14 + $0xe4] ss:$8 sps:$4 sm:$0xff]   ;;  %v4588_v44 = vld [vmem:[#allocation14 + $0x1b4] ss:$8 sps:$4 sm:$0xff]   ;;  %v4586_v45 = vld [vmem:[#allocation14 + $0x1b0] ss:$8 sps:$4 sm:$0xff]  }
 0x410   :  { %v5193_v58 = vpop.f32.mrb[12].mxu1  ;;  %2806 = vmatprep.subr.bf16.mxu1 %v4096_v50  ;;  %v4168_v50 = vcombine.high %v1174_v46, %v1178_v12 }
 0x411   :  { %v5195_v60 = vpop.f32.mrb[13].mxu1 }
 0x412   :  { %v2547_v63 = vpop.f32.mrb[14].mxu1  ;;  %3652 = vmatpush1.bf16.msra.mxu0 %v4520_v55  ;;  %v4547_v55 = vld [vmem:[#allocation14 + $0xe0] ss:$8 sps:$4 sm:$0xff]  }
 0x413   :  { %2807 = vmatpush1.bf16.msra.mxu1 %v4095_v56  ;;  %v2548_v1 = vpop.f32.mrb[15].mxu1  ;;  %3653 = vmatprep.subr.bf16.mxu0 %v4525_v57  ;;  %v4167_v56 = vcombine.low %v1174_v46, %v1178_v12  ;;  %v4552_v57 = vld [vmem:[#allocation14 + $0xf4] ss:$8 sps:$4 sm:$0xff]   ;;  %v4555_v63 = vld [vmem:[#allocation14 + $0x104] ss:$8 sps:$4 sm:$0xff]  }
 0x414   :  { %2808 = vmatprep.subr.bf16.mxu1 %v4104_v59  ;;  %v4176_v59 = vcombine.high %v1182_v51, %v1186_v53  ;;  %v4597_v12 = vld [vmem:[#allocation14 + $0x1e4] ss:$8 sps:$4 sm:$0xff]   ;;  %v4600_v53 = vld [vmem:[#allocation14 + $0x1f4] ss:$8 sps:$4 sm:$0xff]  }
 0x416   :  { %3654 = vmatpush1.bf16.msra.mxu0 %v4523_v0  ;;  %v5201_v0 = vld [vmem:[%s5250_s10] sm:$0xff] }
 0x417   :  { %2809 = vmatpush1.bf16.msra.mxu1 %v4103_v2  ;;  %3655 = vmatprep.subr.bf16.mxu0 %v4528_v3  ;;  %v1192_v1 = vrot.slane %v5201_v0, %v5117_v8  ;;  %v1196_v2 = vrot.slane %v5201_v0, %v5123_v10  ;;  %v1200_v46 = vrot.slane %v5201_v0, %v507_v21 }
 0x418   :  { %2810 = vmatprep.subr.bf16.mxu1 %v4112_v4 }
 0x419   :  { %v2544_v3 = vadd.f32 %v5193_v58, %v1192_v1  ;;  %v2546_v4 = vadd.f32 %v5195_v60, %v1196_v2  ;;  %v4556_v58 = vld [vmem:[#allocation14 + $0x110] ss:$8 sps:$4 sm:$0xff]   ;;  %v4561_v60 = vld [vmem:[#allocation14 + $0x124] ss:$8 sps:$4 sm:$0xff]  }
 0x41a   :  { %3656 = vmatpush1.bf16.msra.mxu0 %v4526_v6 }
 0x41b   :  { %2811 = vmatpush1.bf16.msra.mxu1 %v4111_v11  ;;  %3657 = vmatprep.subr.bf16.mxu0 %v4531_v13 }
 0x41c   :  { %2812 = vmatprep.subr.bf16.mxu1 %v4120_v14 }
 0x41e   :  { %3658 = vmatpush1.bf16.msra.mxu0 %v4529_v17 }
 0x41f   :  { %2813 = vmatpush1.bf16.msra.mxu1 %v4119_v18  ;;  %3659 = vmatprep.subr.bf16.mxu0 %v4534_v19  ;;  %v4553_v19 = vld [vmem:[#allocation14 + $0x100] ss:$8 sps:$4 sm:$0xff]  }
 0x420   :  { %2814 = vmatprep.subr.bf16.mxu1 %v4128_v20 }
 0x422   :  { %3660 = vmatpush1.bf16.msra.mxu0 %v4532_v25  ;;  %v4564_v25 = vld [vmem:[#allocation14 + $0x134] ss:$8 sps:$4 sm:$0xff]  }
 0x423   :  { %2815 = vmatpush1.bf16.msra.mxu1 %v4127_v26  ;;  %3661 = vmatprep.subr.bf16.mxu0 %v4537_v29  ;;  %v4562_v26 = vld [vmem:[#allocation14 + $0x130] ss:$8 sps:$4 sm:$0xff]   ;;  %v4567_v29 = vld [vmem:[#allocation14 + $0x144] ss:$8 sps:$4 sm:$0xff]  }
 0x424   :  { %2816 = vmatprep.subr.bf16.mxu1 %v4136_v30  ;;  %v4565_v30 = vld [vmem:[#allocation14 + $0x140] ss:$8 sps:$4 sm:$0xff]  }
 0x426   :  { %3662 = vmatpush1.bf16.msra.mxu0 %v4535_v33  ;;  %v4573_v33 = vld [vmem:[#allocation14 + $0x164] ss:$8 sps:$4 sm:$0xff]  }
 0x427   :  { %2817 = vmatpush1.bf16.msra.mxu1 %v4135_v34  ;;  %3663 = vmatprep.subr.bf16.mxu0 %v4540_v35  ;;  %v4571_v34 = vld [vmem:[#allocation14 + $0x160] ss:$8 sps:$4 sm:$0xff]   ;;  %v4576_v35 = vld [vmem:[#allocation14 + $0x174] ss:$8 sps:$4 sm:$0xff]  }
 0x428   :  { %2818 = vmatprep.subr.bf16.mxu1 %v4144_v38  ;;  %v4574_v38 = vld [vmem:[#allocation14 + $0x170] ss:$8 sps:$4 sm:$0xff]  }
 0x42a   :  { %3664 = vmatpush1.bf16.msra.mxu0 %v4538_v41  ;;  %v4582_v41 = vld [vmem:[#allocation14 + $0x194] ss:$8 sps:$4 sm:$0xff]  }
 0x42b   :  { %2819 = vmatpush1.bf16.msra.mxu1 %v4143_v42  ;;  %3665 = vmatprep.subr.bf16.mxu0 %v4543_v43  ;;  %v4580_v42 = vld [vmem:[#allocation14 + $0x190] ss:$8 sps:$4 sm:$0xff]   ;;  %v4585_v43 = vld [vmem:[#allocation14 + $0x1a4] ss:$8 sps:$4 sm:$0xff]  }
 0x42c   :  { %2820 = vmatprep.subr.bf16.mxu1 %v4152_v28  ;;  %v4583_v28 = vld [vmem:[#allocation14 + $0x1a0] ss:$8 sps:$4 sm:$0xff]  }
 0x42e   :  { %3666 = vmatpush1.bf16.msra.mxu0 %v4541_v36  ;;  %v4591_v36 = vld [vmem:[#allocation14 + $0x1c4] ss:$8 sps:$4 sm:$0xff]  }
 0x42f   :  { %2821 = vmatpush1.bf16.msra.mxu1 %v4151_v52  ;;  %3667 = vmatprep.subr.bf16.mxu0 %v4546_v37  ;;  %v4589_v52 = vld [vmem:[#allocation14 + $0x1c0] ss:$8 sps:$4 sm:$0xff]   ;;  %v4594_v37 = vld [vmem:[#allocation14 + $0x1d4] ss:$8 sps:$4 sm:$0xff]  }
 0x430   :  { %2822 = vmatprep.subr.bf16.mxu1 %v4160_v39  ;;  %v4592_v39 = vld [vmem:[#allocation14 + $0x1d0] ss:$8 sps:$4 sm:$0xff]  }
 0x432   :  { %3668 = vmatpush1.bf16.msra.mxu0 %v4544_v47  ;;  %v1204_v47 = vrot.slane %v5201_v0, %v511_v22  ;;  %v4601_v22 = vld [vmem:[#allocation14 + $0x200] ss:$8 sps:$4 sm:$0xff]  }
 0x433   :  { %2823 = vmatpush1.bf16.msra.mxu1 %v4159_v48  ;;  %3669 = vmatprep.subr.bf16.mxu0 %v4549_v49  ;;  %v4595_v49 = vld [vmem:[#allocation14 + $0x1e0] ss:$8 sps:$4 sm:$0xff]  }
 0x434   :  { %2824 = vmatprep.subr.bf16.mxu1 %v4168_v50 }
 0x436   :  { %3670 = vmatpush1.bf16.msra.mxu0 %v4547_v55 }
 0x437   :  { %2825 = vmatpush1.bf16.msra.mxu1 %v4167_v56  ;;  %3671 = vmatprep.subr.bf16.mxu0 %v4552_v57 }
 0x438   :  { %2826 = vmatprep.subr.bf16.mxu1 %v4176_v59 }
 0x43a   :  { %3672 = vmatpush1.bf16.msra.mxu0 %v4550_v61 }
 0x43b   :  { %2827 = vmatpush1.bf16.msra.mxu1 %v4175_v62  ;;  %3682 = vmatprep.subr.bf16.mxu0 %v4555_v63  ;;  %v4598_v62 = vld [vmem:[#allocation14 + $0x1f0] ss:$8 sps:$4 sm:$0xff]   ;;  %v4603_v63 = vld [vmem:[#allocation14 + $0x204] ss:$8 sps:$4 sm:$0xff]  }
 0x43e   :  { %2829 = vmatmul.mubr.bf16.vlgmr.msra.gmra.mrb[20].mxu1 %v5176_v54 }
 0x450   :  { %v2584_v9 = vpop.f32.mrb[8].mxu0 }
 0x451   :  { %v2585_v5 = vadd.f32 %v2584_v9, %v2544_v3  ;;  %v2586_v6 = vpop.f32.mrb[9].mxu0  ;;  %v4604_v9 = vld [vmem:[#allocation14 + $0x210] ss:$8 sps:$4 sm:$0xff]  }
 0x452   :  { %v2587_v11 = vadd.f32 %v2586_v6, %v2546_v4  ;;  %v2588_v54 = vpop.f32.mrb[10].mxu0  ;;  %v4606_v4 = vld [vmem:[#allocation14 + $0x214] ss:$8 sps:$4 sm:$0xff]   ;;  %v4607_v6 = vld [vmem:[#allocation14 + $0x220] ss:$8 sps:$4 sm:$0xff]  }
 0x453   :  { %v2837_v13 = vmul.f32 0.2, %v2585_v5  ;;  %v2589_v14 = vpop.f32.mrb[11].mxu0  ;;  %v4610_v54 = vld [vmem:[#allocation14 + $0x230] ss:$8 sps:$4 sm:$0xff]  }
 0x454   :  { %v2838_v15 = vmul.f32 0.2, %v2587_v11  ;;  %v4613_v14 = vld [vmem:[#allocation14 + $0x240] ss:$8 sps:$4 sm:$0xff]  }
 0x455   :  { %v2845_v16 = vmax.f32 %v2585_v5, %v2837_v13  ;;  %v4609_v5 = vld [vmem:[#allocation14 + $0x224] ss:$8 sps:$4 sm:$0xff]  }
 0x456   :  { %v2846_v17 = vmax.f32 %v2587_v11, %v2838_v15  ;;  %v4612_v11 = vld [vmem:[#allocation14 + $0x234] ss:$8 sps:$4 sm:$0xff]   ;;  %v4615_v13 = vld [vmem:[#allocation14 + $0x244] ss:$8 sps:$4 sm:$0xff]  }
 0x457   :  { %v2853_v20 = vpack.c.bf16 %v2845_v16, %v2845_v16  ;;  %v4618_v15 = vld [vmem:[#allocation14 + $0x254] ss:$8 sps:$4 sm:$0xff]   ;;  %v4616_v16 = vld [vmem:[#allocation14 + $0x250] ss:$8 sps:$4 sm:$0xff]  }
 0x458   :  { %v2854_v18 = vpack.c.bf16 %v2846_v17, %v2846_v17  ;;  %v4621_v17 = vld [vmem:[#allocation14 + $0x264] ss:$8 sps:$4 sm:$0xff]  }
 0x45a   :  { %3673 = vmatprep.mubr.bf16.mxu0 %v2854_v18  ;;  %v4619_v18 = vld [vmem:[#allocation14 + $0x260] ss:$8 sps:$4 sm:$0xff]  }
 0x45b   :  { %3674 = vmatmul.mubr.bf16.vlgmr.msra.gmra.mrb[16].mxu0 %v2853_v20  ;;  %v4622_v20 = vld [vmem:[#allocation14 + $0x270] ss:$8 sps:$4 sm:$0xff]  }
 0x45c   :  { %3683 = vmatpush1.bf16.msra.mxu0 %v4553_v19  ;;  %v4624_v19 = vld [vmem:[#allocation14 + $0x274] ss:$8 sps:$4 sm:$0xff]  }
 0x45d   :  { %3684 = vmatprep.subr.bf16.mxu0 %v4558_v23  ;;  %v4627_v23 = vld [vmem:[#allocation14 + $0x284] ss:$8 sps:$4 sm:$0xff]  }
 0x460   :  { %3685 = vmatpush1.bf16.msra.mxu0 %v4556_v58  ;;  %v4625_v58 = vld [vmem:[#allocation14 + $0x280] ss:$8 sps:$4 sm:$0xff]  }
 0x461   :  { %3686 = vmatprep.subr.bf16.mxu0 %v4561_v60  ;;  %v4630_v60 = vld [vmem:[#allocation14 + $0x294] ss:$8 sps:$4 sm:$0xff]  }
 0x464   :  { %3687 = vmatpush1.bf16.msra.mxu0 %v4559_v24  ;;  %v4628_v24 = vld [vmem:[#allocation14 + $0x290] ss:$8 sps:$4 sm:$0xff]  }
 0x465   :  { %3688 = vmatprep.subr.bf16.mxu0 %v4564_v25  ;;  %v4633_v25 = vld [vmem:[#allocation14 + $0x2a4] ss:$8 sps:$4 sm:$0xff]  }
 0x468   :  { %3689 = vmatpush1.bf16.msra.mxu0 %v4562_v26  ;;  %v4631_v26 = vld [vmem:[#allocation14 + $0x2a0] ss:$8 sps:$4 sm:$0xff]  }
 0x469   :  { %3690 = vmatprep.subr.bf16.mxu0 %v4567_v29  ;;  %v4636_v29 = vld [vmem:[#allocation14 + $0x2b4] ss:$8 sps:$4 sm:$0xff]  }
 0x46c   :  { %3691 = vmatpush1.bf16.msra.mxu0 %v4565_v30  ;;  %v4634_v30 = vld [vmem:[#allocation14 + $0x2b0] ss:$8 sps:$4 sm:$0xff]  }
 0x46d   :  { %3692 = vmatprep.subr.bf16.mxu0 %v4570_v31  ;;  %v4639_v31 = vld [vmem:[#allocation14 + $0x2c4] ss:$8 sps:$4 sm:$0xff]  }
 0x470   :  { %3693 = vmatpush1.bf16.msra.mxu0 %v4568_v32  ;;  %v4637_v32 = vld [vmem:[#allocation14 + $0x2c0] ss:$8 sps:$4 sm:$0xff]  }
 0x471   :  { %3694 = vmatprep.subr.bf16.mxu0 %v4573_v33  ;;  %v4642_v33 = vld [vmem:[#allocation14 + $0x2d4] ss:$8 sps:$4 sm:$0xff]  }
 0x474   :  { %3695 = vmatpush1.bf16.msra.mxu0 %v4571_v34  ;;  %v1207_v34 = vsub.s32 4, %v5114_v7 }
 0x475   :  { %3696 = vmatprep.subr.bf16.mxu0 %v4576_v35  ;;  %v1211_v35 = vsub.s32 5, %v5114_v7 }
 0x478   :  { %3697 = vmatpush1.bf16.msra.mxu0 %v4574_v38  ;;  %v4640_v38 = vld [vmem:[#allocation14 + $0x2d0] ss:$8 sps:$4 sm:$0xff]  }
 0x479   :  { %3698 = vmatprep.subr.bf16.mxu0 %v4579_v27  ;;  %v1208_v27 = vrot.slane %v5201_v0, %v1207_v34 }
 0x47c   :  { %3699 = vmatpush1.bf16.msra.mxu0 %v4577_v40  ;;  %v4645_v40 = vld [vmem:[#allocation14 + $0x2e4] ss:$8 sps:$4 sm:$0xff]  }
 0x47d   :  { %3700 = vmatprep.subr.bf16.mxu0 %v4582_v41  ;;  %v1212_v41 = vrot.slane %v5201_v0, %v1211_v35 }
 0x480   :  { %3701 = vmatpush1.bf16.msra.mxu0 %v4580_v42 }
 0x481   :  { %3702 = vmatprep.subr.bf16.mxu0 %v4585_v43  ;;  %v4643_v43 = vld [vmem:[#allocation14 + $0x2e0] ss:$8 sps:$4 sm:$0xff]  }
 0x484   :  { %3703 = vmatpush1.bf16.msra.mxu0 %v4583_v28 }
 0x485   :  { %3704 = vmatprep.subr.bf16.mxu0 %v4588_v44 }
 0x488   :  { %3705 = vmatpush1.bf16.msra.mxu0 %v4586_v45  ;;  %v4648_v45 = vld [vmem:[#allocation14 + $0x2f4] ss:$8 sps:$4 sm:$0xff]  }
 0x489   :  { %3706 = vmatprep.subr.bf16.mxu0 %v4591_v36 }
 0x48c   :  { %3707 = vmatpush1.bf16.msra.mxu0 %v4589_v52 }
 0x48d   :  { %3708 = vmatprep.subr.bf16.mxu0 %v4594_v37 }
 0x490   :  { %3709 = vmatpush1.bf16.msra.mxu0 %v4592_v39  ;;  %v2666_v48 = vpop.f32.mrb[16].mxu1 }
 0x491   :  { %v4330_v50 = vadd.f32 %v2666_v48, %v1200_v46  ;;  %v2668_v51 = vpop.f32.mrb[17].mxu1  ;;  %3710 = vmatprep.subr.bf16.mxu0 %v4597_v12  ;;  %v4646_v12 = vld [vmem:[#allocation14 + $0x2f0] ss:$8 sps:$4 sm:$0xff]   ;;  %v4651_v48 = vld [vmem:[#allocation14 + $0x304] ss:$8 sps:$4 sm:$0xff]  }
 0x492   :  { %v4331_v55 = vadd.f32 %v2668_v51, %v1204_v47  ;;  %v2670_v56 = vpop.f32.mrb[18].mxu1  ;;  %v4649_v51 = vld [vmem:[#allocation14 + $0x300] ss:$8 sps:$4 sm:$0xff]  }
 0x493   :  { %v2839_v57 = vmul.f32 0.2, %v4330_v50  ;;  %v2671_v59 = vpop.f32.mrb[19].mxu1  ;;  %v4652_v56 = vld [vmem:[#allocation14 + $0x310] ss:$8 sps:$4 sm:$0xff]  }
 0x494   :  { %v2840_v61 = vmul.f32 0.2, %v4331_v55  ;;  %3711 = vmatpush1.bf16.msra.mxu0 %v4595_v49  ;;  %v4655_v59 = vld [vmem:[#allocation14 + $0x320] ss:$8 sps:$4 sm:$0xff]  }
 0x495   :  { %v2847_v21 = vmax.f32 %v4330_v50, %v2839_v57  ;;  %3712 = vmatprep.subr.bf16.mxu0 %v4600_v53  ;;  %v4657_v57 = vld [vmem:[#allocation14 + $0x324] ss:$8 sps:$4 sm:$0xff]  }
 0x496   :  { %v2848_v1 = vmax.f32 %v4331_v55, %v2840_v61  ;;  %v4654_v55 = vld [vmem:[#allocation14 + $0x314] ss:$8 sps:$4 sm:$0xff]  }
 0x497   :  { %v2855_v3 = vpack.c.bf16 %v2847_v21, %v2847_v21  ;;  %v4660_v61 = vld [vmem:[#allocation14 + $0x334] ss:$8 sps:$4 sm:$0xff]   ;;  %v4663_v21 = vld [vmem:[#allocation14 + $0x344] ss:$8 sps:$4 sm:$0xff]  }
 0x498   :  { %v2856_v2 = vpack.c.bf16 %v2848_v1, %v2848_v1  ;;  %3713 = vmatpush1.bf16.msra.mxu0 %v4598_v62  ;;  %v4658_v62 = vld [vmem:[#allocation14 + $0x330] ss:$8 sps:$4 sm:$0xff]   ;;  %v4666_v1 = vld [vmem:[#allocation14 + $0x354] ss:$8 sps:$4 sm:$0xff]  }
 0x499   :  { %3723 = vmatprep.subr.bf16.mxu0 %v4603_v63  ;;  %v4661_v63 = vld [vmem:[#allocation14 + $0x340] ss:$8 sps:$4 sm:$0xff]  }
 0x49a   :  { %3714 = vmatprep.mubr.bf16.mxu0 %v2856_v2  ;;  %v4664_v2 = vld [vmem:[#allocation14 + $0x350] ss:$8 sps:$4 sm:$0xff]  }
 0x49b   :  { %3715 = vmatmul.mubr.bf16.vlgmr.msra.gmra.mrb[16].mxu0 %v2855_v3  ;;  %v4667_v3 = vld [vmem:[#allocation14 + $0x360] ss:$8 sps:$4 sm:$0xff]  }
 0x49c   :  { %3724 = vmatpush1.bf16.msra.mxu0 %v4601_v22  ;;  %v4669_v22 = vld [vmem:[#allocation14 + $0x364] ss:$8 sps:$4 sm:$0xff]  }
 0x49d   :  { %3725 = vmatprep.subr.bf16.mxu0 %v4606_v4  ;;  %v4672_v4 = vld [vmem:[#allocation14 + $0x374] ss:$8 sps:$4 sm:$0xff]  }
 0x4a0   :  { %3726 = vmatpush1.bf16.msra.mxu0 %v4604_v9  ;;  %v4670_v9 = vld [vmem:[#allocation14 + $0x370] ss:$8 sps:$4 sm:$0xff]  }
 0x4a1   :  { %3727 = vmatprep.subr.bf16.mxu0 %v4609_v5  ;;  %v4675_v5 = vld [vmem:[#allocation14 + $0x384] ss:$8 sps:$4 sm:$0xff]  }
 0x4a4   :  { %3728 = vmatpush1.bf16.msra.mxu0 %v4607_v6  ;;  %v4673_v6 = vld [vmem:[#allocation14 + $0x380] ss:$8 sps:$4 sm:$0xff]  }
 0x4a5   :  { %3729 = vmatprep.subr.bf16.mxu0 %v4612_v11  ;;  %v4678_v11 = vld [vmem:[#allocation14 + $0x394] ss:$8 sps:$4 sm:$0xff]  }
 0x4a8   :  { %3730 = vmatpush1.bf16.msra.mxu0 %v4610_v54  ;;  %v4676_v54 = vld [vmem:[#allocation14 + $0x390] ss:$8 sps:$4 sm:$0xff]  }
 0x4a9   :  { %3731 = vmatprep.subr.bf16.mxu0 %v4615_v13  ;;  %v4681_v13 = vld [vmem:[#allocation14 + $0x3a4] ss:$8 sps:$4 sm:$0xff]  }
 0x4ac   :  { %3732 = vmatpush1.bf16.msra.mxu0 %v4613_v14  ;;  %v4679_v14 = vld [vmem:[#allocation14 + $0x3a0] ss:$8 sps:$4 sm:$0xff]  }
 0x4ad   :  { %3733 = vmatprep.subr.bf16.mxu0 %v4618_v15  ;;  %v4684_v15 = vld [vmem:[#allocation14 + $0x3b4] ss:$8 sps:$4 sm:$0xff]  }
 0x4b0   :  { %3734 = vmatpush1.bf16.msra.mxu0 %v4616_v16  ;;  %v4682_v16 = vld [vmem:[#allocation14 + $0x3b0] ss:$8 sps:$4 sm:$0xff]  }
 0x4b1   :  { %3735 = vmatprep.subr.bf16.mxu0 %v4621_v17  ;;  %v4687_v17 = vld [vmem:[#allocation14 + $0x3c4] ss:$8 sps:$4 sm:$0xff]  }
 0x4b4   :  { %3736 = vmatpush1.bf16.msra.mxu0 %v4619_v18  ;;  %v4685_v18 = vld [vmem:[#allocation14 + $0x3c0] ss:$8 sps:$4 sm:$0xff]  }
 0x4b5   :  { %3737 = vmatprep.subr.bf16.mxu0 %v4624_v19  ;;  %v4690_v19 = vld [vmem:[#allocation14 + $0x3d4] ss:$8 sps:$4 sm:$0xff]  }
 0x4b8   :  { %3738 = vmatpush1.bf16.msra.mxu0 %v4622_v20  ;;  %v1215_v20 = vsub.s32 6, %v5114_v7 }
 0x4b9   :  { %3739 = vmatprep.subr.bf16.mxu0 %v4627_v23  ;;  %v1219_v23 = vsub.s32 7, %v5114_v7  ;;  %v4694_v7 = vld [vmem:[#allocation14 + $0x3f0] ss:$8 sps:$4 sm:$0xff]  }
 0x4bc   :  { %3740 = vmatpush1.bf16.msra.mxu0 %v4625_v58  ;;  %v4688_v58 = vld [vmem:[#allocation14 + $0x3d0] ss:$8 sps:$4 sm:$0xff]  }
 0x4bd   :  { %3741 = vmatprep.subr.bf16.mxu0 %v4630_v60  ;;  %v4693_v60 = vld [vmem:[#allocation14 + $0x3e4] ss:$8 sps:$4 sm:$0xff]  }
 0x4c0   :  { %3742 = vmatpush1.bf16.msra.mxu0 %v4628_v24  ;;  %v1216_v24 = vrot.slane %v5201_v0, %v1215_v20 }
 0x4c1   :  { %3743 = vmatprep.subr.bf16.mxu0 %v4633_v25  ;;  %v1220_v25 = vrot.slane %v5201_v0, %v1219_v23 }
 0x4c4   :  { %3744 = vmatpush1.bf16.msra.mxu0 %v4631_v26  ;;  %v4691_v26 = vld [vmem:[#allocation14 + $0x3e0] ss:$8 sps:$4 sm:$0xff]  }
 0x4c5   :  { %3745 = vmatprep.subr.bf16.mxu0 %v4636_v29 }
 0x4c8   :  { %3746 = vmatpush1.bf16.msra.mxu0 %v4634_v30  ;;  %v4696_v30 = vld [vmem:[#allocation14 + $0x3f4] ss:$8 sps:$4 sm:$0xff]  }
 0x4c9   :  { %3747 = vmatprep.subr.bf16.mxu0 %v4639_v31 }
 0x4cc   :  { %3748 = vmatpush1.bf16.msra.mxu0 %v4637_v32 }
 0x4cd   :  { %3749 = vmatprep.subr.bf16.mxu0 %v4642_v33 }
 0x4d0   :  { %v2748_v42 = vpop.f32.mrb[12].mxu0  ;;  %3750 = vmatpush1.bf16.msra.mxu0 %v4640_v38 }
 0x4d1   :  { %v4332_v28 = vadd.f32 %v2748_v42, %v1208_v27  ;;  %v2750_v44 = vpop.f32.mrb[13].mxu0  ;;  %3751 = vmatprep.subr.bf16.mxu0 %v4645_v40 }
 0x4d2   :  { %v4333_v36 = vadd.f32 %v2750_v44, %v1212_v41  ;;  %v2752_v52 = vpop.f32.mrb[14].mxu0 }
 0x4d3   :  { %v2841_v37 = vmul.f32 0.2, %v4332_v28  ;;  %v2753_v39 = vpop.f32.mrb[15].mxu0 }
 0x4d4   :  { %v2842_v46 = vmul.f32 0.2, %v4333_v36  ;;  %3752 = vmatpush1.bf16.msra.mxu0 %v4643_v43  ;;  %v2989_v43 = vld [vmem:[%s5252_s12] sm:$0x3]  ;;  %s4877_s12 = scalar_lea.vmem %s3823_s20, 128 }
 0x4d5   :  { %v2849_v47 = vmax.f32 %v4332_v28, %v2841_v37  ;;  %3753 = vmatprep.subr.bf16.mxu0 %v4648_v45  ;;  %v2994_v28 = vrot.slane %v2989_v43, %v5117_v8  ;;  %v2998_v44 = vrot.slane %v2989_v43, %v5123_v10  ;;  %p4878_p8 = scmp.ne.s32.totalorder %s3823_s20, %s4877_s12  ;;  %p4883_p10 = scmp.lt.s32.totalorder %s4877_s12, %s4877_s12 }
 0x4d6   :  { %v2850_v49 = vmax.f32 %v4333_v36, %v2842_v46 }
 0x4d7   :  { %v2857_v53 = vpack.c.bf16 %v2849_v47, %v2849_v47  ;;  %p4884_p11 = por %p4883_p10, %p4882_p9 }
 0x4d8   :  { %v2858_v50 = vpack.c.bf16 %v2850_v49, %v2850_v49  ;;  %3754 = vmatpush1.bf16.msra.mxu0 %v4646_v12 }
 0x4d9   :  { %3764 = vmatprep.subr.bf16.mxu0 %v4651_v48  ;;  %p4885_p12 = pnand %p4884_p11, %p4878_p8 }
 0x4da   :  { %3755 = vmatprep.mubr.bf16.mxu0 %v2858_v50 }
 0x4db   :  { %3756 = vmatmul.mubr.bf16.vlgmr.msra.gmra.mrb[16].mxu0 %v2857_v53 }
 0x4dc   :  { %3765 = vmatpush1.bf16.msra.mxu0 %v4649_v51 }
 0x4dd   :  { %3766 = vmatprep.subr.bf16.mxu0 %v4654_v55 }
 0x4e0   :  { %3767 = vmatpush1.bf16.msra.mxu0 %v4652_v56 }
 0x4e1   :  { %3768 = vmatprep.subr.bf16.mxu0 %v4657_v57 }
 0x4e4   :  { %3769 = vmatpush1.bf16.msra.mxu0 %v4655_v59 }
 0x4e5   :  { %3770 = vmatprep.subr.bf16.mxu0 %v4660_v61 }
 0x4e8   :  { %3771 = vmatpush1.bf16.msra.mxu0 %v4658_v62 }
 0x4e9   :  { %3772 = vmatprep.subr.bf16.mxu0 %v4663_v21 }
 0x4ec   :  { %3773 = vmatpush1.bf16.msra.mxu0 %v4661_v63 }
 0x4ed   :  { %3774 = vmatprep.subr.bf16.mxu0 %v4666_v1 }
 0x4f0   :  { %3775 = vmatpush1.bf16.msra.mxu0 %v4664_v2 }
 0x4f1   :  { %3776 = vmatprep.subr.bf16.mxu0 %v4669_v22 }
 0x4f4   :  { %3777 = vmatpush1.bf16.msra.mxu0 %v4667_v3 }
 0x4f5   :  { %3778 = vmatprep.subr.bf16.mxu0 %v4672_v4 }
 0x4f8   :  { %3779 = vmatpush1.bf16.msra.mxu0 %v4670_v9 }
 0x4f9   :  { %3780 = vmatprep.subr.bf16.mxu0 %v4675_v5 }
 0x4fc   :  { %3781 = vmatpush1.bf16.msra.mxu0 %v4673_v6 }
 0x4fd   :  { %3782 = vmatprep.subr.bf16.mxu0 %v4678_v11 }
 0x500   :  { %3783 = vmatpush1.bf16.msra.mxu0 %v4676_v54 }
 0x501   :  { %3784 = vmatprep.subr.bf16.mxu0 %v4681_v13 }
 0x504   :  { %3785 = vmatpush1.bf16.msra.mxu0 %v4679_v14 }
 0x505   :  { %3786 = vmatprep.subr.bf16.mxu0 %v4684_v15 }
 0x508   :  { %3787 = vmatpush1.bf16.msra.mxu0 %v4682_v16 }
 0x509   :  { %3788 = vmatprep.subr.bf16.mxu0 %v4687_v17 }
 0x50c   :  { %3789 = vmatpush1.bf16.msra.mxu0 %v4685_v18 }
 0x50d   :  { %3790 = vmatprep.subr.bf16.mxu0 %v4690_v19 }
 0x510   :  { %3791 = vmatpush1.bf16.msra.mxu0 %v4688_v58 }
 0x511   :  { %v2830_v29 = vpop.f32.mrb[20].mxu1  ;;  %3792 = vmatprep.subr.bf16.mxu0 %v4693_v60 }
 0x512   :  { %v4334_v31 = vadd.f32 %v2830_v29, %v1216_v24  ;;  %v2832_v32 = vpop.f32.mrb[21].mxu1 }
 0x513   :  { %v4335_v33 = vadd.f32 %v2832_v32, %v1220_v25  ;;  %v2834_v34 = vpop.f32.mrb[22].mxu1 }
 0x514   :  { %v2843_v35 = vmul.f32 0.2, %v4334_v31  ;;  %v2835_v38 = vpop.f32.mrb[23].mxu1  ;;  %3793 = vmatpush1.bf16.msra.mxu0 %v4691_v26 }
 0x515   :  { %v2844_v27 = vmul.f32 0.2, %v4335_v33  ;;  %3794 = vmatprep.subr.bf16.mxu0 %v4696_v30 }
 0x516   :  { %v2851_v40 = vmax.f32 %v4334_v31, %v2843_v35 }
 0x517   :  { %v2852_v41 = vmax.f32 %v4335_v33, %v2844_v27 }
 0x518   :  { %3795 = vmatpush1.bf16.msra.mxu0 %v4694_v7  ;;  %v2859_v0 = vpack.c.bf16 %v2851_v40, %v2851_v40 }
 0x519   :  { %v2860_v42 = vpack.c.bf16 %v2852_v41, %v2852_v41 }
 0x51b   :  { %3796 = vmatprep.mubr.bf16.mxu0 %v2860_v42 }
 0x51c   :  { %3797 = vmatmul.mubr.bf16.vlgmr.msra.gmra.mrb[16].mxu0 %v2859_v0 }
 0x5ef   :  { %v3798_v45 = vpop.f32.mrb[16].mxu0 }
 0x5f0   :  { %v4336_v36 = vadd.f32 %v3798_v45, %v2994_v28  ;;  %v3800_v52 = vpop.f32.mrb[17].mxu0 }
 0x5f1   :  { %v4337_v37 = vadd.f32 %v3800_v52, %v2998_v44  ;;  %v3802_v39 = vpop.f32.mrb[18].mxu0 }
 0x5f2   :  { %4697 = vtanh.f32 %v4336_v36  ;;  %v3803_v46 = vpop.f32.mrb[19].mxu0 }
 0x5f3   :  { %4699 = vtanh.f32 %v4337_v37 }
 0x5fc   :  { %v4698_v12 = vpop.eup %4697 }
 0x5fd   :  { %v4700_v47 = vpop.eup %4699 }
 0x5fe   :  { %v4306_v48 = vpack.c.bf16 %v4700_v47, %v4698_v12 }
 0x600   :  { %3815 = vst [vmem:[#allocation16] sm:$0xff] %v4306_v48 }
 0x601   :  { %4888 = shalt.err (!%p4885_p12)
}
 0x602   :  { %s4889_s22 = scalar_lea.hbm %s5253_s13, 128 }
 0x603   :  { %p4890_p13 = scmp.ne.s32.totalorder %s5253_s13, %s4889_s22  ;;  %p4893_p0 = scmp.lt.u32.totalorder %s4889_s22, %s5253_s13 }
 0x605   :  { %p4895_p1 = pnand %p4893_p0, %p4890_p13 }
 0x607   :  { %4898 = shalt.err (!%p4895_p1)
}
 0x608   :  { %3825 = dma.vmem_to_hbm [thread:$0]  %s3823_s20, 128, %s5253_s13, [#allocation4]  }
 0x609   :  { %4909 = dma.done.wait [#allocation4], 128  }
 0x60a   :  { %4910 = vsyncadd [#allocation4], 4294967168 }
 0x60b   :  { %3829 = vsyncpa [#allocation3], 1 }
 0x60c   :  { %3830 = vsyncpa [#allocation6], 1 }
 0x60d   :  { %3831 = vsyncpa [#allocation9], 1 }
 0x60e   :  { %3832 = vsyncpa [#allocation12], 1 }
 0x60f   :  { %3833 = vsyncpa [#allocation15], 1 }
 0x610   :  { %3834 = vsyncpa [#allocation4], 1 }

</bundles_post_ra>
